<compile_context>
chip_gen: v6e
topology: v6e:2x2x1
jax: 0.10.0
libtpu: 0.0.40
codegen_flags: <defaults>
</compile_context>

<pallas_src>
import jax
import jax.numpy as jnp
from jax.experimental import pallas as pl
from jax.experimental.pallas import tpu as pltpu


def generator_kernel(x_ref, wlin_ref, blin_ref, wih_ref, whh_ref, blstm_ref,
                     wout_ref, bout_ref, out_ref):
    B, T = out_ref.shape
    H = whh_ref.shape[0]

    # --- x = self.linear(x): (B, L) @ (L, T) + b -> per-step LSTM inputs ---
    seq = jnp.dot(x_ref[...], wlin_ref[...],
                  preferred_element_type=jnp.float32) + blin_ref[...]      # (B, T)

    wih = wih_ref[...]        # (1, 4H)   input->gate weights (input_size == 1)
    whh = whh_ref[...]        # (H, 4H)   recurrent weights (W_hh^T)
    blstm = blstm_ref[...]    # (1, 4H)   b_ih + b_hh
    wout = wout_ref[...]      # (1, H)    output projection row
    bout = bout_ref[...]      # (1, 1)

    # Lane mask selecting the g-gate quarter so one full-width sigmoid + one
    # full-width tanh cover all four gates (PyTorch gate order: i, f, g, o).
    lane = jax.lax.broadcasted_iota(jnp.int32, (B, 4 * H), dimension=1)
    g_mask = (lane >= 2 * H) & (lane < 3 * H)

    h = jnp.zeros((B, H), jnp.float32)
    c = jnp.zeros((B, H), jnp.float32)

    # --- sequential LSTM recurrence, fully unrolled; h/c live in vregs ---
    for t in range(T):
        gates = (seq[:, t:t + 1] * wih + blstm
                 + jnp.dot(h, whh, preferred_element_type=jnp.float32))    # (B, 4H)
        act = jnp.where(g_mask, jnp.tanh(gates), jax.nn.sigmoid(gates))
        i_g = act[:, 0:H]
        f_g = act[:, H:2 * H]
        g_g = act[:, 2 * H:3 * H]
        o_g = act[:, 3 * H:4 * H]
        c = f_g * c + i_g * g_g
        h = o_g * jnp.tanh(c)
        # fused x = self.out(h): lane-reduce over H (XLU), store lane-dense row.
        out_ref[:, t:t + 1] = jnp.sum(h * wout, axis=-1, keepdims=True) + bout


def generator_forward(x, params, hidden_size):
    """x: (B, latent_dim) float32  ->  (B, output_channels, 1) float32."""
    B, _ = x.shape
    H = hidden_size
    W_lin = params["W_lin"]                          # (T, L)  PyTorch Linear layout
    T = W_lin.shape[0]

    wlinT = W_lin.T                                  # (L, T)
    blin = params["b_lin"].reshape(1, T)             # (1, T)
    wih = params["W_ih"].reshape(1, 4 * H)           # (4H, 1) -> (1, 4H)
    whh = params["W_hh"].T                           # (H, 4H)
    blstm = (params["b_ih"] + params["b_hh"]).reshape(1, 4 * H)
    wout = params["W_out"].reshape(1, H)             # (1, H)
    bout = params["b_out"].reshape(1, 1)             # (1, 1)

    vmem = pl.BlockSpec(memory_space=pltpu.MemorySpace.VMEM)
    out2d = pl.pallas_call(
        generator_kernel,
        out_shape=jax.ShapeDtypeStruct((B, T), jnp.float32),
        in_specs=[vmem] * 8,
        out_specs=vmem,
    )(x, wlinT, blin, wih, whh, blstm, wout, bout)

    # (B, T) -> (B, T, 1)  (matches PyTorch output shape)
    return out2d[:, :, None]


def init_params(key, latent_dim, output_channels, hidden_size):
    ks = jax.random.split(key, 8)
    s = 0.1
    return {
        "W_lin": s * jax.random.normal(ks[0], (output_channels, latent_dim), jnp.float32),
        "b_lin": s * jax.random.normal(ks[1], (output_channels,), jnp.float32),
        "W_ih": s * jax.random.normal(ks[2], (4 * hidden_size, 1), jnp.float32),
        "W_hh": s * jax.random.normal(ks[3], (4 * hidden_size, hidden_size), jnp.float32),
        "b_ih": s * jax.random.normal(ks[4], (4 * hidden_size,), jnp.float32),
        "b_hh": s * jax.random.normal(ks[5], (4 * hidden_size,), jnp.float32),
        "W_out": s * jax.random.normal(ks[6], (1, hidden_size), jnp.float32),
        "b_out": s * jax.random.normal(ks[7], (1,), jnp.float32),
    }


def reference_forward(x, params, hidden_size):
    """Pure-JAX re-implementation of the PyTorch forward (for validation)."""
    H = hidden_size
    s = x @ params["W_lin"].T + params["b_lin"]          # (B, T)
    B, T = s.shape
    h = jnp.zeros((B, H), jnp.float32)
    c = jnp.zeros((B, H), jnp.float32)
    outs = []
    for t in range(T):
        x_t = s[:, t:t + 1]                              # (B, 1)
        gates = (x_t @ params["W_ih"].T + h @ params["W_hh"].T
                 + params["b_ih"] + params["b_hh"])
        i_g = jax.nn.sigmoid(gates[:, 0:H])
        f_g = jax.nn.sigmoid(gates[:, H:2 * H])
        g_g = jnp.tanh(gates[:, 2 * H:3 * H])
        o_g = jax.nn.sigmoid(gates[:, 3 * H:4 * H])
        c = f_g * c + i_g * g_g
        h = o_g * jnp.tanh(c)
        outs.append(h @ params["W_out"].T + params["b_out"])
    return jnp.stack(outs, axis=1)                       # (B, T, 1)


if __name__ == "__main__":
    # Small shapes consistent with the module's forward.
    batch = 2
    latent_dim = 8          # Generator latent_dim
    output_channels = 16    # Generator output_channels (== LSTM sequence length)
    hidden_size = 32        # Generator hidden_size

    key = jax.random.PRNGKey(0)
    k_x, k_p = jax.random.split(key)
    x = jax.random.normal(k_x, (batch, latent_dim), jnp.float32)
    params = init_params(k_p, latent_dim, output_channels, hidden_size)

    y = generator_forward(x, params, hidden_size)
    y = jax.block_until_ready(y)

    y_ref = reference_forward(x, params, hidden_size)
    assert y.shape == (batch, output_channels, 1), y.shape
    assert jnp.allclose(y, y_ref, atol=1e-4, rtol=1e-4), (
        float(jnp.max(jnp.abs(y - y_ref))))

    print("KERNEL_OK")
</pallas_src>

<mosaic_0001>
module attributes {stable_mosaic.version = 11 : i64} {
  func.func @generator_kernel(%arg0: memref<2x8xf32, #tpu.memory_space<vmem>>, %arg1: memref<8x16xf32, #tpu.memory_space<vmem>>, %arg2: memref<1x16xf32, #tpu.memory_space<vmem>>, %arg3: memref<1x128xf32, #tpu.memory_space<vmem>>, %arg4: memref<32x128xf32, #tpu.memory_space<vmem>>, %arg5: memref<1x128xf32, #tpu.memory_space<vmem>>, %arg6: memref<1x32xf32, #tpu.memory_space<vmem>>, %arg7: memref<1x1xf32, #tpu.memory_space<vmem>>, %arg8: memref<2x16xf32, #tpu.memory_space<vmem>>) attributes {dimension_semantics = [], scalar_prefetch = 0 : i64, scratch_operands = 0 : i64, tpu.core_type = #tpu.core_type<tc>} {
    %c0 = arith.constant 0 : index
    %c0_0 = arith.constant 0 : index
    %0 = vector.load %arg0[%c0, %c0_0] : memref<2x8xf32, #tpu.memory_space<vmem>>, vector<2x8xf32>
    %c0_1 = arith.constant 0 : index
    %c0_2 = arith.constant 0 : index
    %1 = vector.load %arg1[%c0_1, %c0_2] : memref<8x16xf32, #tpu.memory_space<vmem>>, vector<8x16xf32>
    %cst = arith.constant dense<0.000000e+00> : vector<2x16xf32>
    %2 = tpu.matmul %0, %1, %cst {dimension_numbers = #tpu.dot_dimension_numbers<[1], [0], [0], [1], [0, 0, 1, 1], [], []>} : vector<2x8xf32>, vector<8x16xf32>, vector<2x16xf32> -> vector<2x16xf32>
    %c0_3 = arith.constant 0 : index
    %c0_4 = arith.constant 0 : index
    %3 = vector.load %arg2[%c0_3, %c0_4] : memref<1x16xf32, #tpu.memory_space<vmem>>, vector<1x16xf32>
    %4 = vector.broadcast %3 : vector<1x16xf32> to vector<2x16xf32>
    %5 = arith.addf %2, %4 : vector<2x16xf32>
    %c0_5 = arith.constant 0 : index
    %c0_6 = arith.constant 0 : index
    %6 = vector.load %arg3[%c0_5, %c0_6] : memref<1x128xf32, #tpu.memory_space<vmem>>, vector<1x128xf32>
    %c0_7 = arith.constant 0 : index
    %c0_8 = arith.constant 0 : index
    %7 = vector.load %arg4[%c0_7, %c0_8] : memref<32x128xf32, #tpu.memory_space<vmem>>, vector<32x128xf32>
    %c0_9 = arith.constant 0 : index
    %c0_10 = arith.constant 0 : index
    %8 = vector.load %arg5[%c0_9, %c0_10] : memref<1x128xf32, #tpu.memory_space<vmem>>, vector<1x128xf32>
    %c0_11 = arith.constant 0 : index
    %c0_12 = arith.constant 0 : index
    %9 = vector.load %arg6[%c0_11, %c0_12] : memref<1x32xf32, #tpu.memory_space<vmem>>, vector<1x32xf32>
    %c0_13 = arith.constant 0 : index
    %c0_14 = arith.constant 0 : index
    %10 = vector.load %arg7[%c0_13, %c0_14] : memref<1x1xf32, #tpu.memory_space<vmem>>, vector<1x1xf32>
    %11 = tpu.iota {dimensions = array<i32: 1>} : vector<2x128xi32>
    %c64_i32 = arith.constant 64 : i32
    %12 = vector.broadcast %c64_i32 : i32 to vector<2x128xi32>
    %13 = arith.cmpi sge, %11, %12 : vector<2x128xi32>
    %c96_i32 = arith.constant 96 : i32
    %14 = vector.broadcast %c96_i32 : i32 to vector<2x128xi32>
    %15 = arith.cmpi slt, %11, %14 : vector<2x128xi32>
    %16 = arith.andi %13, %15 : vector<2x128xi1>
    %cst_15 = arith.constant 0.000000e+00 : f32
    %17 = vector.broadcast %cst_15 : f32 to vector<2x32xf32>
    %cst_16 = arith.constant 0.000000e+00 : f32
    %18 = vector.broadcast %cst_16 : f32 to vector<2x32xf32>
    %19 = vector.extract_strided_slice %5 {offsets = [0, 0], sizes = [2, 1], strides = [1, 1]} : vector<2x16xf32> to vector<2x1xf32>
    %20 = vector.broadcast %19 : vector<2x1xf32> to vector<2x128xf32>
    %21 = vector.broadcast %6 : vector<1x128xf32> to vector<2x128xf32>
    %22 = arith.mulf %20, %21 : vector<2x128xf32>
    %23 = vector.broadcast %8 : vector<1x128xf32> to vector<2x128xf32>
    %24 = arith.addf %22, %23 : vector<2x128xf32>
    %cst_17 = arith.constant dense<0.000000e+00> : vector<2x128xf32>
    %25 = tpu.matmul %17, %7, %cst_17 {dimension_numbers = #tpu.dot_dimension_numbers<[1], [0], [0], [1], [0, 0, 1, 1], [], []>} : vector<2x32xf32>, vector<32x128xf32>, vector<2x128xf32> -> vector<2x128xf32>
    %26 = arith.addf %24, %25 : vector<2x128xf32>
    %27 = math.tanh %26 : vector<2x128xf32>
    %28 = arith.negf %26 : vector<2x128xf32>
    %29 = math.exp %28 : vector<2x128xf32>
    %cst_18 = arith.constant 1.000000e+00 : f32
    %30 = vector.broadcast %cst_18 : f32 to vector<2x128xf32>
    %31 = arith.addf %30, %29 : vector<2x128xf32>
    %32 = arith.divf %30, %31 : vector<2x128xf32>
    %33 = arith.select %16, %27, %32 : vector<2x128xi1>, vector<2x128xf32>
    %34 = vector.extract_strided_slice %33 {offsets = [0, 0], sizes = [2, 32], strides = [1, 1]} : vector<2x128xf32> to vector<2x32xf32>
    %35 = vector.extract_strided_slice %33 {offsets = [0, 32], sizes = [2, 32], strides = [1, 1]} : vector<2x128xf32> to vector<2x32xf32>
    %36 = vector.extract_strided_slice %33 {offsets = [0, 64], sizes = [2, 32], strides = [1, 1]} : vector<2x128xf32> to vector<2x32xf32>
    %37 = vector.extract_strided_slice %33 {offsets = [0, 96], sizes = [2, 32], strides = [1, 1]} : vector<2x128xf32> to vector<2x32xf32>
    %38 = arith.mulf %35, %18 : vector<2x32xf32>
    %39 = arith.mulf %34, %36 : vector<2x32xf32>
    %40 = arith.addf %38, %39 : vector<2x32xf32>
    %41 = math.tanh %40 : vector<2x32xf32>
    %42 = arith.mulf %37, %41 : vector<2x32xf32>
    %43 = vector.broadcast %9 : vector<1x32xf32> to vector<2x32xf32>
    %44 = arith.mulf %42, %43 : vector<2x32xf32>
    %cst_19 = arith.constant dense<0.000000e+00> : vector<2xf32>
    %45 = vector.multi_reduction <add>, %44, %cst_19 [1] : vector<2x32xf32> to vector<2xf32>
    %46 = vector.shape_cast %45 : vector<2xf32> to vector<2x1xf32>
    %47 = vector.broadcast %10 : vector<1x1xf32> to vector<2x1xf32>
    %48 = arith.addf %46, %47 : vector<2x1xf32>
    %c0_20 = arith.constant 0 : index
    %c0_21 = arith.constant 0 : index
    %49 = vector.load %arg8[%c0_20, %c0_21] : memref<2x16xf32, #tpu.memory_space<vmem>>, vector<2x1xf32>
    tpu.vector_store %arg8[%c0_20, %c0_21], %48 {strides = array<i32>} : memref<2x16xf32, #tpu.memory_space<vmem>>, vector<2x1xf32>,
    %50 = vector.extract_strided_slice %5 {offsets = [0, 1], sizes = [2, 1], strides = [1, 1]} : vector<2x16xf32> to vector<2x1xf32>
    %51 = vector.broadcast %50 : vector<2x1xf32> to vector<2x128xf32>
    %52 = vector.broadcast %6 : vector<1x128xf32> to vector<2x128xf32>
    %53 = arith.mulf %51, %52 : vector<2x128xf32>
    %54 = vector.broadcast %8 : vector<1x128xf32> to vector<2x128xf32>
    %55 = arith.addf %53, %54 : vector<2x128xf32>
    %cst_22 = arith.constant dense<0.000000e+00> : vector<2x128xf32>
    %56 = tpu.matmul %42, %7, %cst_22 {dimension_numbers = #tpu.dot_dimension_numbers<[1], [0], [0], [1], [0, 0, 1, 1], [], []>} : vector<2x32xf32>, vector<32x128xf32>, vector<2x128xf32> -> vector<2x128xf32>
    %57 = arith.addf %55, %56 : vector<2x128xf32>
    %58 = math.tanh %57 : vector<2x128xf32>
    %59 = arith.negf %57 : vector<2x128xf32>
    %60 = math.exp %59 : vector<2x128xf32>
    %cst_23 = arith.constant 1.000000e+00 : f32
    %61 = vector.broadcast %cst_23 : f32 to vector<2x128xf32>
    %62 = arith.addf %61, %60 : vector<2x128xf32>
    %63 = arith.divf %61, %62 : vector<2x128xf32>
    %64 = arith.select %16, %58, %63 : vector<2x128xi1>, vector<2x128xf32>
    %65 = vector.extract_strided_slice %64 {offsets = [0, 0], sizes = [2, 32], strides = [1, 1]} : vector<2x128xf32> to vector<2x32xf32>
    %66 = vector.extract_strided_slice %64 {offsets = [0, 32], sizes = [2, 32], strides = [1, 1]} : vector<2x128xf32> to vector<2x32xf32>
    %67 = vector.extract_strided_slice %64 {offsets = [0, 64], sizes = [2, 32], strides = [1, 1]} : vector<2x128xf32> to vector<2x32xf32>
    %68 = vector.extract_strided_slice %64 {offsets = [0, 96], sizes = [2, 32], strides = [1, 1]} : vector<2x128xf32> to vector<2x32xf32>
    %69 = arith.mulf %66, %40 : vector<2x32xf32>
    %70 = arith.mulf %65, %67 : vector<2x32xf32>
    %71 = arith.addf %69, %70 : vector<2x32xf32>
    %72 = math.tanh %71 : vector<2x32xf32>
    %73 = arith.mulf %68, %72 : vector<2x32xf32>
    %74 = vector.broadcast %9 : vector<1x32xf32> to vector<2x32xf32>
    %75 = arith.mulf %73, %74 : vector<2x32xf32>
    %cst_24 = arith.constant dense<0.000000e+00> : vector<2xf32>
    %76 = vector.multi_reduction <add>, %75, %cst_24 [1] : vector<2x32xf32> to vector<2xf32>
    %77 = vector.shape_cast %76 : vector<2xf32> to vector<2x1xf32>
    %78 = vector.broadcast %10 : vector<1x1xf32> to vector<2x1xf32>
    %79 = arith.addf %77, %78 : vector<2x1xf32>
    %c0_25 = arith.constant 0 : index
    %c1 = arith.constant 1 : index
    %80 = vector.load %arg8[%c0_25, %c1] : memref<2x16xf32, #tpu.memory_space<vmem>>, vector<2x1xf32>
    tpu.vector_store %arg8[%c0_25, %c1], %79 {strides = array<i32>} : memref<2x16xf32, #tpu.memory_space<vmem>>, vector<2x1xf32>,
    %81 = vector.extract_strided_slice %5 {offsets = [0, 2], sizes = [2, 1], strides = [1, 1]} : vector<2x16xf32> to vector<2x1xf32>
    %82 = vector.broadcast %81 : vector<2x1xf32> to vector<2x128xf32>
    %83 = vector.broadcast %6 : vector<1x128xf32> to vector<2x128xf32>
    %84 = arith.mulf %82, %83 : vector<2x128xf32>
    %85 = vector.broadcast %8 : vector<1x128xf32> to vector<2x128xf32>
    %86 = arith.addf %84, %85 : vector<2x128xf32>
    %cst_26 = arith.constant dense<0.000000e+00> : vector<2x128xf32>
    %87 = tpu.matmul %73, %7, %cst_26 {dimension_numbers = #tpu.dot_dimension_numbers<[1], [0], [0], [1], [0, 0, 1, 1], [], []>} : vector<2x32xf32>, vector<32x128xf32>, vector<2x128xf32> -> vector<2x128xf32>
    %88 = arith.addf %86, %87 : vector<2x128xf32>
    %89 = math.tanh %88 : vector<2x128xf32>
    %90 = arith.negf %88 : vector<2x128xf32>
    %91 = math.exp %90 : vector<2x128xf32>
    %cst_27 = arith.constant 1.000000e+00 : f32
    %92 = vector.broadcast %cst_27 : f32 to vector<2x128xf32>
    %93 = arith.addf %92, %91 : vector<2x128xf32>
    %94 = arith.divf %92, %93 : vector<2x128xf32>
    %95 = arith.select %16, %89, %94 : vector<2x128xi1>, vector<2x128xf32>
    %96 = vector.extract_strided_slice %95 {offsets = [0, 0], sizes = [2, 32], strides = [1, 1]} : vector<2x128xf32> to vector<2x32xf32>
    %97 = vector.extract_strided_slice %95 {offsets = [0, 32], sizes = [2, 32], strides = [1, 1]} : vector<2x128xf32> to vector<2x32xf32>
    %98 = vector.extract_strided_slice %95 {offsets = [0, 64], sizes = [2, 32], strides = [1, 1]} : vector<2x128xf32> to vector<2x32xf32>
    %99 = vector.extract_strided_slice %95 {offsets = [0, 96], sizes = [2, 32], strides = [1, 1]} : vector<2x128xf32> to vector<2x32xf32>
    %100 = arith.mulf %97, %71 : vector<2x32xf32>
    %101 = arith.mulf %96, %98 : vector<2x32xf32>
    %102 = arith.addf %100, %101 : vector<2x32xf32>
    %103 = math.tanh %102 : vector<2x32xf32>
    %104 = arith.mulf %99, %103 : vector<2x32xf32>
    %105 = vector.broadcast %9 : vector<1x32xf32> to vector<2x32xf32>
    %106 = arith.mulf %104, %105 : vector<2x32xf32>
    %cst_28 = arith.constant dense<0.000000e+00> : vector<2xf32>
    %107 = vector.multi_reduction <add>, %106, %cst_28 [1] : vector<2x32xf32> to vector<2xf32>
    %108 = vector.shape_cast %107 : vector<2xf32> to vector<2x1xf32>
    %109 = vector.broadcast %10 : vector<1x1xf32> to vector<2x1xf32>
    %110 = arith.addf %108, %109 : vector<2x1xf32>
    %c0_29 = arith.constant 0 : index
    %c2 = arith.constant 2 : index
    %111 = vector.load %arg8[%c0_29, %c2] : memref<2x16xf32, #tpu.memory_space<vmem>>, vector<2x1xf32>
    tpu.vector_store %arg8[%c0_29, %c2], %110 {strides = array<i32>} : memref<2x16xf32, #tpu.memory_space<vmem>>, vector<2x1xf32>,
    %112 = vector.extract_strided_slice %5 {offsets = [0, 3], sizes = [2, 1], strides = [1, 1]} : vector<2x16xf32> to vector<2x1xf32>
    %113 = vector.broadcast %112 : vector<2x1xf32> to vector<2x128xf32>
    %114 = vector.broadcast %6 : vector<1x128xf32> to vector<2x128xf32>
    %115 = arith.mulf %113, %114 : vector<2x128xf32>
    %116 = vector.broadcast %8 : vector<1x128xf32> to vector<2x128xf32>
    %117 = arith.addf %115, %116 : vector<2x128xf32>
    %cst_30 = arith.constant dense<0.000000e+00> : vector<2x128xf32>
    %118 = tpu.matmul %104, %7, %cst_30 {dimension_numbers = #tpu.dot_dimension_numbers<[1], [0], [0], [1], [0, 0, 1, 1], [], []>} : vector<2x32xf32>, vector<32x128xf32>, vector<2x128xf32> -> vector<2x128xf32>
    %119 = arith.addf %117, %118 : vector<2x128xf32>
    %120 = math.tanh %119 : vector<2x128xf32>
    %121 = arith.negf %119 : vector<2x128xf32>
    %122 = math.exp %121 : vector<2x128xf32>
    %cst_31 = arith.constant 1.000000e+00 : f32
    %123 = vector.broadcast %cst_31 : f32 to vector<2x128xf32>
    %124 = arith.addf %123, %122 : vector<2x128xf32>
    %125 = arith.divf %123, %124 : vector<2x128xf32>
    %126 = arith.select %16, %120, %125 : vector<2x128xi1>, vector<2x128xf32>
    %127 = vector.extract_strided_slice %126 {offsets = [0, 0], sizes = [2, 32], strides = [1, 1]} : vector<2x128xf32> to vector<2x32xf32>
    %128 = vector.extract_strided_slice %126 {offsets = [0, 32], sizes = [2, 32], strides = [1, 1]} : vector<2x128xf32> to vector<2x32xf32>
    %129 = vector.extract_strided_slice %126 {offsets = [0, 64], sizes = [2, 32], strides = [1, 1]} : vector<2x128xf32> to vector<2x32xf32>
    %130 = vector.extract_strided_slice %126 {offsets = [0, 96], sizes = [2, 32], strides = [1, 1]} : vector<2x128xf32> to vector<2x32xf32>
    %131 = arith.mulf %128, %102 : vector<2x32xf32>
    %132 = arith.mulf %127, %129 : vector<2x32xf32>
    %133 = arith.addf %131, %132 : vector<2x32xf32>
    %134 = math.tanh %133 : vector<2x32xf32>
    %135 = arith.mulf %130, %134 : vector<2x32xf32>
    %136 = vector.broadcast %9 : vector<1x32xf32> to vector<2x32xf32>
    %137 = arith.mulf %135, %136 : vector<2x32xf32>
    %cst_32 = arith.constant dense<0.000000e+00> : vector<2xf32>
    %138 = vector.multi_reduction <add>, %137, %cst_32 [1] : vector<2x32xf32> to vector<2xf32>
    %139 = vector.shape_cast %138 : vector<2xf32> to vector<2x1xf32>
    %140 = vector.broadcast %10 : vector<1x1xf32> to vector<2x1xf32>
    %141 = arith.addf %139, %140 : vector<2x1xf32>
    %c0_33 = arith.constant 0 : index
    %c3 = arith.constant 3 : index
    %142 = vector.load %arg8[%c0_33, %c3] : memref<2x16xf32, #tpu.memory_space<vmem>>, vector<2x1xf32>
    tpu.vector_store %arg8[%c0_33, %c3], %141 {strides = array<i32>} : memref<2x16xf32, #tpu.memory_space<vmem>>, vector<2x1xf32>,
    %143 = vector.extract_strided_slice %5 {offsets = [0, 4], sizes = [2, 1], strides = [1, 1]} : vector<2x16xf32> to vector<2x1xf32>
    %144 = vector.broadcast %143 : vector<2x1xf32> to vector<2x128xf32>
    %145 = vector.broadcast %6 : vector<1x128xf32> to vector<2x128xf32>
    %146 = arith.mulf %144, %145 : vector<2x128xf32>
    %147 = vector.broadcast %8 : vector<1x128xf32> to vector<2x128xf32>
    %148 = arith.addf %146, %147 : vector<2x128xf32>
    %cst_34 = arith.constant dense<0.000000e+00> : vector<2x128xf32>
    %149 = tpu.matmul %135, %7, %cst_34 {dimension_numbers = #tpu.dot_dimension_numbers<[1], [0], [0], [1], [0, 0, 1, 1], [], []>} : vector<2x32xf32>, vector<32x128xf32>, vector<2x128xf32> -> vector<2x128xf32>
    %150 = arith.addf %148, %149 : vector<2x128xf32>
    %151 = math.tanh %150 : vector<2x128xf32>
    %152 = arith.negf %150 : vector<2x128xf32>
    %153 = math.exp %152 : vector<2x128xf32>
    %cst_35 = arith.constant 1.000000e+00 : f32
    %154 = vector.broadcast %cst_35 : f32 to vector<2x128xf32>
    %155 = arith.addf %154, %153 : vector<2x128xf32>
    %156 = arith.divf %154, %155 : vector<2x128xf32>
    %157 = arith.select %16, %151, %156 : vector<2x128xi1>, vector<2x128xf32>
    %158 = vector.extract_strided_slice %157 {offsets = [0, 0], sizes = [2, 32], strides = [1, 1]} : vector<2x128xf32> to vector<2x32xf32>
    %159 = vector.extract_strided_slice %157 {offsets = [0, 32], sizes = [2, 32], strides = [1, 1]} : vector<2x128xf32> to vector<2x32xf32>
    %160 = vector.extract_strided_slice %157 {offsets = [0, 64], sizes = [2, 32], strides = [1, 1]} : vector<2x128xf32> to vector<2x32xf32>
    %161 = vector.extract_strided_slice %157 {offsets = [0, 96], sizes = [2, 32], strides = [1, 1]} : vector<2x128xf32> to vector<2x32xf32>
    %162 = arith.mulf %159, %133 : vector<2x32xf32>
    %163 = arith.mulf %158, %160 : vector<2x32xf32>
    %164 = arith.addf %162, %163 : vector<2x32xf32>
    %165 = math.tanh %164 : vector<2x32xf32>
    %166 = arith.mulf %161, %165 : vector<2x32xf32>
    %167 = vector.broadcast %9 : vector<1x32xf32> to vector<2x32xf32>
    %168 = arith.mulf %166, %167 : vector<2x32xf32>
    %cst_36 = arith.constant dense<0.000000e+00> : vector<2xf32>
    %169 = vector.multi_reduction <add>, %168, %cst_36 [1] : vector<2x32xf32> to vector<2xf32>
    %170 = vector.shape_cast %169 : vector<2xf32> to vector<2x1xf32>
    %171 = vector.broadcast %10 : vector<1x1xf32> to vector<2x1xf32>
    %172 = arith.addf %170, %171 : vector<2x1xf32>
    %c0_37 = arith.constant 0 : index
    %c4 = arith.constant 4 : index
    %173 = vector.load %arg8[%c0_37, %c4] : memref<2x16xf32, #tpu.memory_space<vmem>>, vector<2x1xf32>
    tpu.vector_store %arg8[%c0_37, %c4], %172 {strides = array<i32>} : memref<2x16xf32, #tpu.memory_space<vmem>>, vector<2x1xf32>,
    %174 = vector.extract_strided_slice %5 {offsets = [0, 5], sizes = [2, 1], strides = [1, 1]} : vector<2x16xf32> to vector<2x1xf32>
    %175 = vector.broadcast %174 : vector<2x1xf32> to vector<2x128xf32>
    %176 = vector.broadcast %6 : vector<1x128xf32> to vector<2x128xf32>
    %177 = arith.mulf %175, %176 : vector<2x128xf32>
    %178 = vector.broadcast %8 : vector<1x128xf32> to vector<2x128xf32>
    %179 = arith.addf %177, %178 : vector<2x128xf32>
    %cst_38 = arith.constant dense<0.000000e+00> : vector<2x128xf32>
    %180 = tpu.matmul %166, %7, %cst_38 {dimension_numbers = #tpu.dot_dimension_numbers<[1], [0], [0], [1], [0, 0, 1, 1], [], []>} : vector<2x32xf32>, vector<32x128xf32>, vector<2x128xf32> -> vector<2x128xf32>
    %181 = arith.addf %179, %180 : vector<2x128xf32>
    %182 = math.tanh %181 : vector<2x128xf32>
    %183 = arith.negf %181 : vector<2x128xf32>
    %184 = math.exp %183 : vector<2x128xf32>
    %cst_39 = arith.constant 1.000000e+00 : f32
    %185 = vector.broadcast %cst_39 : f32 to vector<2x128xf32>
    %186 = arith.addf %185, %184 : vector<2x128xf32>
    %187 = arith.divf %185, %186 : vector<2x128xf32>
    %188 = arith.select %16, %182, %187 : vector<2x128xi1>, vector<2x128xf32>
    %189 = vector.extract_strided_slice %188 {offsets = [0, 0], sizes = [2, 32], strides = [1, 1]} : vector<2x128xf32> to vector<2x32xf32>
    %190 = vector.extract_strided_slice %188 {offsets = [0, 32], sizes = [2, 32], strides = [1, 1]} : vector<2x128xf32> to vector<2x32xf32>
    %191 = vector.extract_strided_slice %188 {offsets = [0, 64], sizes = [2, 32], strides = [1, 1]} : vector<2x128xf32> to vector<2x32xf32>
    %192 = vector.extract_strided_slice %188 {offsets = [0, 96], sizes = [2, 32], strides = [1, 1]} : vector<2x128xf32> to vector<2x32xf32>
    %193 = arith.mulf %190, %164 : vector<2x32xf32>
    %194 = arith.mulf %189, %191 : vector<2x32xf32>
    %195 = arith.addf %193, %194 : vector<2x32xf32>
    %196 = math.tanh %195 : vector<2x32xf32>
    %197 = arith.mulf %192, %196 : vector<2x32xf32>
    %198 = vector.broadcast %9 : vector<1x32xf32> to vector<2x32xf32>
    %199 = arith.mulf %197, %198 : vector<2x32xf32>
    %cst_40 = arith.constant dense<0.000000e+00> : vector<2xf32>
    %200 = vector.multi_reduction <add>, %199, %cst_40 [1] : vector<2x32xf32> to vector<2xf32>
    %201 = vector.shape_cast %200 : vector<2xf32> to vector<2x1xf32>
    %202 = vector.broadcast %10 : vector<1x1xf32> to vector<2x1xf32>
    %203 = arith.addf %201, %202 : vector<2x1xf32>
    %c0_41 = arith.constant 0 : index
    %c5 = arith.constant 5 : index
    %204 = vector.load %arg8[%c0_41, %c5] : memref<2x16xf32, #tpu.memory_space<vmem>>, vector<2x1xf32>
    tpu.vector_store %arg8[%c0_41, %c5], %203 {strides = array<i32>} : memref<2x16xf32, #tpu.memory_space<vmem>>, vector<2x1xf32>,
    %205 = vector.extract_strided_slice %5 {offsets = [0, 6], sizes = [2, 1], strides = [1, 1]} : vector<2x16xf32> to vector<2x1xf32>
    %206 = vector.broadcast %205 : vector<2x1xf32> to vector<2x128xf32>
    %207 = vector.broadcast %6 : vector<1x128xf32> to vector<2x128xf32>
    %208 = arith.mulf %206, %207 : vector<2x128xf32>
    %209 = vector.broadcast %8 : vector<1x128xf32> to vector<2x128xf32>
    %210 = arith.addf %208, %209 : vector<2x128xf32>
    %cst_42 = arith.constant dense<0.000000e+00> : vector<2x128xf32>
    %211 = tpu.matmul %197, %7, %cst_42 {dimension_numbers = #tpu.dot_dimension_numbers<[1], [0], [0], [1], [0, 0, 1, 1], [], []>} : vector<2x32xf32>, vector<32x128xf32>, vector<2x128xf32> -> vector<2x128xf32>
    %212 = arith.addf %210, %211 : vector<2x128xf32>
    %213 = math.tanh %212 : vector<2x128xf32>
    %214 = arith.negf %212 : vector<2x128xf32>
    %215 = math.exp %214 : vector<2x128xf32>
    %cst_43 = arith.constant 1.000000e+00 : f32
    %216 = vector.broadcast %cst_43 : f32 to vector<2x128xf32>
    %217 = arith.addf %216, %215 : vector<2x128xf32>
    %218 = arith.divf %216, %217 : vector<2x128xf32>
    %219 = arith.select %16, %213, %218 : vector<2x128xi1>, vector<2x128xf32>
    %220 = vector.extract_strided_slice %219 {offsets = [0, 0], sizes = [2, 32], strides = [1, 1]} : vector<2x128xf32> to vector<2x32xf32>
    %221 = vector.extract_strided_slice %219 {offsets = [0, 32], sizes = [2, 32], strides = [1, 1]} : vector<2x128xf32> to vector<2x32xf32>
    %222 = vector.extract_strided_slice %219 {offsets = [0, 64], sizes = [2, 32], strides = [1, 1]} : vector<2x128xf32> to vector<2x32xf32>
    %223 = vector.extract_strided_slice %219 {offsets = [0, 96], sizes = [2, 32], strides = [1, 1]} : vector<2x128xf32> to vector<2x32xf32>
    %224 = arith.mulf %221, %195 : vector<2x32xf32>
    %225 = arith.mulf %220, %222 : vector<2x32xf32>
    %226 = arith.addf %224, %225 : vector<2x32xf32>
    %227 = math.tanh %226 : vector<2x32xf32>
    %228 = arith.mulf %223, %227 : vector<2x32xf32>
    %229 = vector.broadcast %9 : vector<1x32xf32> to vector<2x32xf32>
    %230 = arith.mulf %228, %229 : vector<2x32xf32>
    %cst_44 = arith.constant dense<0.000000e+00> : vector<2xf32>
    %231 = vector.multi_reduction <add>, %230, %cst_44 [1] : vector<2x32xf32> to vector<2xf32>
    %232 = vector.shape_cast %231 : vector<2xf32> to vector<2x1xf32>
    %233 = vector.broadcast %10 : vector<1x1xf32> to vector<2x1xf32>
    %234 = arith.addf %232, %233 : vector<2x1xf32>
    %c0_45 = arith.constant 0 : index
    %c6 = arith.constant 6 : index
    %235 = vector.load %arg8[%c0_45, %c6] : memref<2x16xf32, #tpu.memory_space<vmem>>, vector<2x1xf32>
    tpu.vector_store %arg8[%c0_45, %c6], %234 {strides = array<i32>} : memref<2x16xf32, #tpu.memory_space<vmem>>, vector<2x1xf32>,
    %236 = vector.extract_strided_slice %5 {offsets = [0, 7], sizes = [2, 1], strides = [1, 1]} : vector<2x16xf32> to vector<2x1xf32>
    %237 = vector.broadcast %236 : vector<2x1xf32> to vector<2x128xf32>
    %238 = vector.broadcast %6 : vector<1x128xf32> to vector<2x128xf32>
    %239 = arith.mulf %237, %238 : vector<2x128xf32>
    %240 = vector.broadcast %8 : vector<1x128xf32> to vector<2x128xf32>
    %241 = arith.addf %239, %240 : vector<2x128xf32>
    %cst_46 = arith.constant dense<0.000000e+00> : vector<2x128xf32>
    %242 = tpu.matmul %228, %7, %cst_46 {dimension_numbers = #tpu.dot_dimension_numbers<[1], [0], [0], [1], [0, 0, 1, 1], [], []>} : vector<2x32xf32>, vector<32x128xf32>, vector<2x128xf32> -> vector<2x128xf32>
    %243 = arith.addf %241, %242 : vector<2x128xf32>
    %244 = math.tanh %243 : vector<2x128xf32>
    %245 = arith.negf %243 : vector<2x128xf32>
    %246 = math.exp %245 : vector<2x128xf32>
    %cst_47 = arith.constant 1.000000e+00 : f32
    %247 = vector.broadcast %cst_47 : f32 to vector<2x128xf32>
    %248 = arith.addf %247, %246 : vector<2x128xf32>
    %249 = arith.divf %247, %248 : vector<2x128xf32>
    %250 = arith.select %16, %244, %249 : vector<2x128xi1>, vector<2x128xf32>
    %251 = vector.extract_strided_slice %250 {offsets = [0, 0], sizes = [2, 32], strides = [1, 1]} : vector<2x128xf32> to vector<2x32xf32>
    %252 = vector.extract_strided_slice %250 {offsets = [0, 32], sizes = [2, 32], strides = [1, 1]} : vector<2x128xf32> to vector<2x32xf32>
    %253 = vector.extract_strided_slice %250 {offsets = [0, 64], sizes = [2, 32], strides = [1, 1]} : vector<2x128xf32> to vector<2x32xf32>
    %254 = vector.extract_strided_slice %250 {offsets = [0, 96], sizes = [2, 32], strides = [1, 1]} : vector<2x128xf32> to vector<2x32xf32>
    %255 = arith.mulf %252, %226 : vector<2x32xf32>
    %256 = arith.mulf %251, %253 : vector<2x32xf32>
    %257 = arith.addf %255, %256 : vector<2x32xf32>
    %258 = math.tanh %257 : vector<2x32xf32>
    %259 = arith.mulf %254, %258 : vector<2x32xf32>
    %260 = vector.broadcast %9 : vector<1x32xf32> to vector<2x32xf32>
    %261 = arith.mulf %259, %260 : vector<2x32xf32>
    %cst_48 = arith.constant dense<0.000000e+00> : vector<2xf32>
    %262 = vector.multi_reduction <add>, %261, %cst_48 [1] : vector<2x32xf32> to vector<2xf32>
    %263 = vector.shape_cast %262 : vector<2xf32> to vector<2x1xf32>
    %264 = vector.broadcast %10 : vector<1x1xf32> to vector<2x1xf32>
    %265 = arith.addf %263, %264 : vector<2x1xf32>
    %c0_49 = arith.constant 0 : index
    %c7 = arith.constant 7 : index
    %266 = vector.load %arg8[%c0_49, %c7] : memref<2x16xf32, #tpu.memory_space<vmem>>, vector<2x1xf32>
    tpu.vector_store %arg8[%c0_49, %c7], %265 {strides = array<i32>} : memref<2x16xf32, #tpu.memory_space<vmem>>, vector<2x1xf32>,
    %267 = vector.extract_strided_slice %5 {offsets = [0, 8], sizes = [2, 1], strides = [1, 1]} : vector<2x16xf32> to vector<2x1xf32>
    %268 = vector.broadcast %267 : vector<2x1xf32> to vector<2x128xf32>
    %269 = vector.broadcast %6 : vector<1x128xf32> to vector<2x128xf32>
    %270 = arith.mulf %268, %269 : vector<2x128xf32>
    %271 = vector.broadcast %8 : vector<1x128xf32> to vector<2x128xf32>
    %272 = arith.addf %270, %271 : vector<2x128xf32>
    %cst_50 = arith.constant dense<0.000000e+00> : vector<2x128xf32>
    %273 = tpu.matmul %259, %7, %cst_50 {dimension_numbers = #tpu.dot_dimension_numbers<[1], [0], [0], [1], [0, 0, 1, 1], [], []>} : vector<2x32xf32>, vector<32x128xf32>, vector<2x128xf32> -> vector<2x128xf32>
    %274 = arith.addf %272, %273 : vector<2x128xf32>
    %275 = math.tanh %274 : vector<2x128xf32>
    %276 = arith.negf %274 : vector<2x128xf32>
    %277 = math.exp %276 : vector<2x128xf32>
    %cst_51 = arith.constant 1.000000e+00 : f32
    %278 = vector.broadcast %cst_51 : f32 to vector<2x128xf32>
    %279 = arith.addf %278, %277 : vector<2x128xf32>
    %280 = arith.divf %278, %279 : vector<2x128xf32>
    %281 = arith.select %16, %275, %280 : vector<2x128xi1>, vector<2x128xf32>
    %282 = vector.extract_strided_slice %281 {offsets = [0, 0], sizes = [2, 32], strides = [1, 1]} : vector<2x128xf32> to vector<2x32xf32>
    %283 = vector.extract_strided_slice %281 {offsets = [0, 32], sizes = [2, 32], strides = [1, 1]} : vector<2x128xf32> to vector<2x32xf32>
    %284 = vector.extract_strided_slice %281 {offsets = [0, 64], sizes = [2, 32], strides = [1, 1]} : vector<2x128xf32> to vector<2x32xf32>
    %285 = vector.extract_strided_slice %281 {offsets = [0, 96], sizes = [2, 32], strides = [1, 1]} : vector<2x128xf32> to vector<2x32xf32>
    %286 = arith.mulf %283, %257 : vector<2x32xf32>
    %287 = arith.mulf %282, %284 : vector<2x32xf32>
    %288 = arith.addf %286, %287 : vector<2x32xf32>
    %289 = math.tanh %288 : vector<2x32xf32>
    %290 = arith.mulf %285, %289 : vector<2x32xf32>
    %291 = vector.broadcast %9 : vector<1x32xf32> to vector<2x32xf32>
    %292 = arith.mulf %290, %291 : vector<2x32xf32>
    %cst_52 = arith.constant dense<0.000000e+00> : vector<2xf32>
    %293 = vector.multi_reduction <add>, %292, %cst_52 [1] : vector<2x32xf32> to vector<2xf32>
    %294 = vector.shape_cast %293 : vector<2xf32> to vector<2x1xf32>
    %295 = vector.broadcast %10 : vector<1x1xf32> to vector<2x1xf32>
    %296 = arith.addf %294, %295 : vector<2x1xf32>
    %c0_53 = arith.constant 0 : index
    %c8 = arith.constant 8 : index
    %297 = vector.load %arg8[%c0_53, %c8] : memref<2x16xf32, #tpu.memory_space<vmem>>, vector<2x1xf32>
    tpu.vector_store %arg8[%c0_53, %c8], %296 {strides = array<i32>} : memref<2x16xf32, #tpu.memory_space<vmem>>, vector<2x1xf32>,
    %298 = vector.extract_strided_slice %5 {offsets = [0, 9], sizes = [2, 1], strides = [1, 1]} : vector<2x16xf32> to vector<2x1xf32>
    %299 = vector.broadcast %298 : vector<2x1xf32> to vector<2x128xf32>
    %300 = vector.broadcast %6 : vector<1x128xf32> to vector<2x128xf32>
    %301 = arith.mulf %299, %300 : vector<2x128xf32>
    %302 = vector.broadcast %8 : vector<1x128xf32> to vector<2x128xf32>
    %303 = arith.addf %301, %302 : vector<2x128xf32>
    %cst_54 = arith.constant dense<0.000000e+00> : vector<2x128xf32>
    %304 = tpu.matmul %290, %7, %cst_54 {dimension_numbers = #tpu.dot_dimension_numbers<[1], [0], [0], [1], [0, 0, 1, 1], [], []>} : vector<2x32xf32>, vector<32x128xf32>, vector<2x128xf32> -> vector<2x128xf32>
    %305 = arith.addf %303, %304 : vector<2x128xf32>
    %306 = math.tanh %305 : vector<2x128xf32>
    %307 = arith.negf %305 : vector<2x128xf32>
    %308 = math.exp %307 : vector<2x128xf32>
    %cst_55 = arith.constant 1.000000e+00 : f32
    %309 = vector.broadcast %cst_55 : f32 to vector<2x128xf32>
    %310 = arith.addf %309, %308 : vector<2x128xf32>
    %311 = arith.divf %309, %310 : vector<2x128xf32>
    %312 = arith.select %16, %306, %311 : vector<2x128xi1>, vector<2x128xf32>
    %313 = vector.extract_strided_slice %312 {offsets = [0, 0], sizes = [2, 32], strides = [1, 1]} : vector<2x128xf32> to vector<2x32xf32>
    %314 = vector.extract_strided_slice %312 {offsets = [0, 32], sizes = [2, 32], strides = [1, 1]} : vector<2x128xf32> to vector<2x32xf32>
    %315 = vector.extract_strided_slice %312 {offsets = [0, 64], sizes = [2, 32], strides = [1, 1]} : vector<2x128xf32> to vector<2x32xf32>
    %316 = vector.extract_strided_slice %312 {offsets = [0, 96], sizes = [2, 32], strides = [1, 1]} : vector<2x128xf32> to vector<2x32xf32>
    %317 = arith.mulf %314, %288 : vector<2x32xf32>
    %318 = arith.mulf %313, %315 : vector<2x32xf32>
    %319 = arith.addf %317, %318 : vector<2x32xf32>
    %320 = math.tanh %319 : vector<2x32xf32>
    %321 = arith.mulf %316, %320 : vector<2x32xf32>
    %322 = vector.broadcast %9 : vector<1x32xf32> to vector<2x32xf32>
    %323 = arith.mulf %321, %322 : vector<2x32xf32>
    %cst_56 = arith.constant dense<0.000000e+00> : vector<2xf32>
    %324 = vector.multi_reduction <add>, %323, %cst_56 [1] : vector<2x32xf32> to vector<2xf32>
    %325 = vector.shape_cast %324 : vector<2xf32> to vector<2x1xf32>
    %326 = vector.broadcast %10 : vector<1x1xf32> to vector<2x1xf32>
    %327 = arith.addf %325, %326 : vector<2x1xf32>
    %c0_57 = arith.constant 0 : index
    %c9 = arith.constant 9 : index
    %328 = vector.load %arg8[%c0_57, %c9] : memref<2x16xf32, #tpu.memory_space<vmem>>, vector<2x1xf32>
    tpu.vector_store %arg8[%c0_57, %c9], %327 {strides = array<i32>} : memref<2x16xf32, #tpu.memory_space<vmem>>, vector<2x1xf32>,
    %329 = vector.extract_strided_slice %5 {offsets = [0, 10], sizes = [2, 1], strides = [1, 1]} : vector<2x16xf32> to vector<2x1xf32>
    %330 = vector.broadcast %329 : vector<2x1xf32> to vector<2x128xf32>
    %331 = vector.broadcast %6 : vector<1x128xf32> to vector<2x128xf32>
    %332 = arith.mulf %330, %331 : vector<2x128xf32>
    %333 = vector.broadcast %8 : vector<1x128xf32> to vector<2x128xf32>
    %334 = arith.addf %332, %333 : vector<2x128xf32>
    %cst_58 = arith.constant dense<0.000000e+00> : vector<2x128xf32>
    %335 = tpu.matmul %321, %7, %cst_58 {dimension_numbers = #tpu.dot_dimension_numbers<[1], [0], [0], [1], [0, 0, 1, 1], [], []>} : vector<2x32xf32>, vector<32x128xf32>, vector<2x128xf32> -> vector<2x128xf32>
    %336 = arith.addf %334, %335 : vector<2x128xf32>
    %337 = math.tanh %336 : vector<2x128xf32>
    %338 = arith.negf %336 : vector<2x128xf32>
    %339 = math.exp %338 : vector<2x128xf32>
    %cst_59 = arith.constant 1.000000e+00 : f32
    %340 = vector.broadcast %cst_59 : f32 to vector<2x128xf32>
    %341 = arith.addf %340, %339 : vector<2x128xf32>
    %342 = arith.divf %340, %341 : vector<2x128xf32>
    %343 = arith.select %16, %337, %342 : vector<2x128xi1>, vector<2x128xf32>
    %344 = vector.extract_strided_slice %343 {offsets = [0, 0], sizes = [2, 32], strides = [1, 1]} : vector<2x128xf32> to vector<2x32xf32>
    %345 = vector.extract_strided_slice %343 {offsets = [0, 32], sizes = [2, 32], strides = [1, 1]} : vector<2x128xf32> to vector<2x32xf32>
    %346 = vector.extract_strided_slice %343 {offsets = [0, 64], sizes = [2, 32], strides = [1, 1]} : vector<2x128xf32> to vector<2x32xf32>
    %347 = vector.extract_strided_slice %343 {offsets = [0, 96], sizes = [2, 32], strides = [1, 1]} : vector<2x128xf32> to vector<2x32xf32>
    %348 = arith.mulf %345, %319 : vector<2x32xf32>
    %349 = arith.mulf %344, %346 : vector<2x32xf32>
    %350 = arith.addf %348, %349 : vector<2x32xf32>
    %351 = math.tanh %350 : vector<2x32xf32>
    %352 = arith.mulf %347, %351 : vector<2x32xf32>
    %353 = vector.broadcast %9 : vector<1x32xf32> to vector<2x32xf32>
    %354 = arith.mulf %352, %353 : vector<2x32xf32>
    %cst_60 = arith.constant dense<0.000000e+00> : vector<2xf32>
    %355 = vector.multi_reduction <add>, %354, %cst_60 [1] : vector<2x32xf32> to vector<2xf32>
    %356 = vector.shape_cast %355 : vector<2xf32> to vector<2x1xf32>
    %357 = vector.broadcast %10 : vector<1x1xf32> to vector<2x1xf32>
    %358 = arith.addf %356, %357 : vector<2x1xf32>
    %c0_61 = arith.constant 0 : index
    %c10 = arith.constant 10 : index
    %359 = vector.load %arg8[%c0_61, %c10] : memref<2x16xf32, #tpu.memory_space<vmem>>, vector<2x1xf32>
    tpu.vector_store %arg8[%c0_61, %c10], %358 {strides = array<i32>} : memref<2x16xf32, #tpu.memory_space<vmem>>, vector<2x1xf32>,
    %360 = vector.extract_strided_slice %5 {offsets = [0, 11], sizes = [2, 1], strides = [1, 1]} : vector<2x16xf32> to vector<2x1xf32>
    %361 = vector.broadcast %360 : vector<2x1xf32> to vector<2x128xf32>
    %362 = vector.broadcast %6 : vector<1x128xf32> to vector<2x128xf32>
    %363 = arith.mulf %361, %362 : vector<2x128xf32>
    %364 = vector.broadcast %8 : vector<1x128xf32> to vector<2x128xf32>
    %365 = arith.addf %363, %364 : vector<2x128xf32>
    %cst_62 = arith.constant dense<0.000000e+00> : vector<2x128xf32>
    %366 = tpu.matmul %352, %7, %cst_62 {dimension_numbers = #tpu.dot_dimension_numbers<[1], [0], [0], [1], [0, 0, 1, 1], [], []>} : vector<2x32xf32>, vector<32x128xf32>, vector<2x128xf32> -> vector<2x128xf32>
    %367 = arith.addf %365, %366 : vector<2x128xf32>
    %368 = math.tanh %367 : vector<2x128xf32>
    %369 = arith.negf %367 : vector<2x128xf32>
    %370 = math.exp %369 : vector<2x128xf32>
    %cst_63 = arith.constant 1.000000e+00 : f32
    %371 = vector.broadcast %cst_63 : f32 to vector<2x128xf32>
    %372 = arith.addf %371, %370 : vector<2x128xf32>
    %373 = arith.divf %371, %372 : vector<2x128xf32>
    %374 = arith.select %16, %368, %373 : vector<2x128xi1>, vector<2x128xf32>
    %375 = vector.extract_strided_slice %374 {offsets = [0, 0], sizes = [2, 32], strides = [1, 1]} : vector<2x128xf32> to vector<2x32xf32>
    %376 = vector.extract_strided_slice %374 {offsets = [0, 32], sizes = [2, 32], strides = [1, 1]} : vector<2x128xf32> to vector<2x32xf32>
    %377 = vector.extract_strided_slice %374 {offsets = [0, 64], sizes = [2, 32], strides = [1, 1]} : vector<2x128xf32> to vector<2x32xf32>
    %378 = vector.extract_strided_slice %374 {offsets = [0, 96], sizes = [2, 32], strides = [1, 1]} : vector<2x128xf32> to vector<2x32xf32>
    %379 = arith.mulf %376, %350 : vector<2x32xf32>
    %380 = arith.mulf %375, %377 : vector<2x32xf32>
    %381 = arith.addf %379, %380 : vector<2x32xf32>
    %382 = math.tanh %381 : vector<2x32xf32>
    %383 = arith.mulf %378, %382 : vector<2x32xf32>
    %384 = vector.broadcast %9 : vector<1x32xf32> to vector<2x32xf32>
    %385 = arith.mulf %383, %384 : vector<2x32xf32>
    %cst_64 = arith.constant dense<0.000000e+00> : vector<2xf32>
    %386 = vector.multi_reduction <add>, %385, %cst_64 [1] : vector<2x32xf32> to vector<2xf32>
    %387 = vector.shape_cast %386 : vector<2xf32> to vector<2x1xf32>
    %388 = vector.broadcast %10 : vector<1x1xf32> to vector<2x1xf32>
    %389 = arith.addf %387, %388 : vector<2x1xf32>
    %c0_65 = arith.constant 0 : index
    %c11 = arith.constant 11 : index
    %390 = vector.load %arg8[%c0_65, %c11] : memref<2x16xf32, #tpu.memory_space<vmem>>, vector<2x1xf32>
    tpu.vector_store %arg8[%c0_65, %c11], %389 {strides = array<i32>} : memref<2x16xf32, #tpu.memory_space<vmem>>, vector<2x1xf32>,
    %391 = vector.extract_strided_slice %5 {offsets = [0, 12], sizes = [2, 1], strides = [1, 1]} : vector<2x16xf32> to vector<2x1xf32>
    %392 = vector.broadcast %391 : vector<2x1xf32> to vector<2x128xf32>
    %393 = vector.broadcast %6 : vector<1x128xf32> to vector<2x128xf32>
    %394 = arith.mulf %392, %393 : vector<2x128xf32>
    %395 = vector.broadcast %8 : vector<1x128xf32> to vector<2x128xf32>
    %396 = arith.addf %394, %395 : vector<2x128xf32>
    %cst_66 = arith.constant dense<0.000000e+00> : vector<2x128xf32>
    %397 = tpu.matmul %383, %7, %cst_66 {dimension_numbers = #tpu.dot_dimension_numbers<[1], [0], [0], [1], [0, 0, 1, 1], [], []>} : vector<2x32xf32>, vector<32x128xf32>, vector<2x128xf32> -> vector<2x128xf32>
    %398 = arith.addf %396, %397 : vector<2x128xf32>
    %399 = math.tanh %398 : vector<2x128xf32>
    %400 = arith.negf %398 : vector<2x128xf32>
    %401 = math.exp %400 : vector<2x128xf32>
    %cst_67 = arith.constant 1.000000e+00 : f32
    %402 = vector.broadcast %cst_67 : f32 to vector<2x128xf32>
    %403 = arith.addf %402, %401 : vector<2x128xf32>
    %404 = arith.divf %402, %403 : vector<2x128xf32>
    %405 = arith.select %16, %399, %404 : vector<2x128xi1>, vector<2x128xf32>
    %406 = vector.extract_strided_slice %405 {offsets = [0, 0], sizes = [2, 32], strides = [1, 1]} : vector<2x128xf32> to vector<2x32xf32>
    %407 = vector.extract_strided_slice %405 {offsets = [0, 32], sizes = [2, 32], strides = [1, 1]} : vector<2x128xf32> to vector<2x32xf32>
    %408 = vector.extract_strided_slice %405 {offsets = [0, 64], sizes = [2, 32], strides = [1, 1]} : vector<2x128xf32> to vector<2x32xf32>
    %409 = vector.extract_strided_slice %405 {offsets = [0, 96], sizes = [2, 32], strides = [1, 1]} : vector<2x128xf32> to vector<2x32xf32>
    %410 = arith.mulf %407, %381 : vector<2x32xf32>
    %411 = arith.mulf %406, %408 : vector<2x32xf32>
    %412 = arith.addf %410, %411 : vector<2x32xf32>
    %413 = math.tanh %412 : vector<2x32xf32>
    %414 = arith.mulf %409, %413 : vector<2x32xf32>
    %415 = vector.broadcast %9 : vector<1x32xf32> to vector<2x32xf32>
    %416 = arith.mulf %414, %415 : vector<2x32xf32>
    %cst_68 = arith.constant dense<0.000000e+00> : vector<2xf32>
    %417 = vector.multi_reduction <add>, %416, %cst_68 [1] : vector<2x32xf32> to vector<2xf32>
    %418 = vector.shape_cast %417 : vector<2xf32> to vector<2x1xf32>
    %419 = vector.broadcast %10 : vector<1x1xf32> to vector<2x1xf32>
    %420 = arith.addf %418, %419 : vector<2x1xf32>
    %c0_69 = arith.constant 0 : index
    %c12 = arith.constant 12 : index
    %421 = vector.load %arg8[%c0_69, %c12] : memref<2x16xf32, #tpu.memory_space<vmem>>, vector<2x1xf32>
    tpu.vector_store %arg8[%c0_69, %c12], %420 {strides = array<i32>} : memref<2x16xf32, #tpu.memory_space<vmem>>, vector<2x1xf32>,
    %422 = vector.extract_strided_slice %5 {offsets = [0, 13], sizes = [2, 1], strides = [1, 1]} : vector<2x16xf32> to vector<2x1xf32>
    %423 = vector.broadcast %422 : vector<2x1xf32> to vector<2x128xf32>
    %424 = vector.broadcast %6 : vector<1x128xf32> to vector<2x128xf32>
    %425 = arith.mulf %423, %424 : vector<2x128xf32>
    %426 = vector.broadcast %8 : vector<1x128xf32> to vector<2x128xf32>
    %427 = arith.addf %425, %426 : vector<2x128xf32>
    %cst_70 = arith.constant dense<0.000000e+00> : vector<2x128xf32>
    %428 = tpu.matmul %414, %7, %cst_70 {dimension_numbers = #tpu.dot_dimension_numbers<[1], [0], [0], [1], [0, 0, 1, 1], [], []>} : vector<2x32xf32>, vector<32x128xf32>, vector<2x128xf32> -> vector<2x128xf32>
    %429 = arith.addf %427, %428 : vector<2x128xf32>
    %430 = math.tanh %429 : vector<2x128xf32>
    %431 = arith.negf %429 : vector<2x128xf32>
    %432 = math.exp %431 : vector<2x128xf32>
    %cst_71 = arith.constant 1.000000e+00 : f32
    %433 = vector.broadcast %cst_71 : f32 to vector<2x128xf32>
    %434 = arith.addf %433, %432 : vector<2x128xf32>
    %435 = arith.divf %433, %434 : vector<2x128xf32>
    %436 = arith.select %16, %430, %435 : vector<2x128xi1>, vector<2x128xf32>
    %437 = vector.extract_strided_slice %436 {offsets = [0, 0], sizes = [2, 32], strides = [1, 1]} : vector<2x128xf32> to vector<2x32xf32>
    %438 = vector.extract_strided_slice %436 {offsets = [0, 32], sizes = [2, 32], strides = [1, 1]} : vector<2x128xf32> to vector<2x32xf32>
    %439 = vector.extract_strided_slice %436 {offsets = [0, 64], sizes = [2, 32], strides = [1, 1]} : vector<2x128xf32> to vector<2x32xf32>
    %440 = vector.extract_strided_slice %436 {offsets = [0, 96], sizes = [2, 32], strides = [1, 1]} : vector<2x128xf32> to vector<2x32xf32>
    %441 = arith.mulf %438, %412 : vector<2x32xf32>
    %442 = arith.mulf %437, %439 : vector<2x32xf32>
    %443 = arith.addf %441, %442 : vector<2x32xf32>
    %444 = math.tanh %443 : vector<2x32xf32>
    %445 = arith.mulf %440, %444 : vector<2x32xf32>
    %446 = vector.broadcast %9 : vector<1x32xf32> to vector<2x32xf32>
    %447 = arith.mulf %445, %446 : vector<2x32xf32>
    %cst_72 = arith.constant dense<0.000000e+00> : vector<2xf32>
    %448 = vector.multi_reduction <add>, %447, %cst_72 [1] : vector<2x32xf32> to vector<2xf32>
    %449 = vector.shape_cast %448 : vector<2xf32> to vector<2x1xf32>
    %450 = vector.broadcast %10 : vector<1x1xf32> to vector<2x1xf32>
    %451 = arith.addf %449, %450 : vector<2x1xf32>
    %c0_73 = arith.constant 0 : index
    %c13 = arith.constant 13 : index
    %452 = vector.load %arg8[%c0_73, %c13] : memref<2x16xf32, #tpu.memory_space<vmem>>, vector<2x1xf32>
    tpu.vector_store %arg8[%c0_73, %c13], %451 {strides = array<i32>} : memref<2x16xf32, #tpu.memory_space<vmem>>, vector<2x1xf32>,
    %453 = vector.extract_strided_slice %5 {offsets = [0, 14], sizes = [2, 1], strides = [1, 1]} : vector<2x16xf32> to vector<2x1xf32>
    %454 = vector.broadcast %453 : vector<2x1xf32> to vector<2x128xf32>
    %455 = vector.broadcast %6 : vector<1x128xf32> to vector<2x128xf32>
    %456 = arith.mulf %454, %455 : vector<2x128xf32>
    %457 = vector.broadcast %8 : vector<1x128xf32> to vector<2x128xf32>
    %458 = arith.addf %456, %457 : vector<2x128xf32>
    %cst_74 = arith.constant dense<0.000000e+00> : vector<2x128xf32>
    %459 = tpu.matmul %445, %7, %cst_74 {dimension_numbers = #tpu.dot_dimension_numbers<[1], [0], [0], [1], [0, 0, 1, 1], [], []>} : vector<2x32xf32>, vector<32x128xf32>, vector<2x128xf32> -> vector<2x128xf32>
    %460 = arith.addf %458, %459 : vector<2x128xf32>
    %461 = math.tanh %460 : vector<2x128xf32>
    %462 = arith.negf %460 : vector<2x128xf32>
    %463 = math.exp %462 : vector<2x128xf32>
    %cst_75 = arith.constant 1.000000e+00 : f32
    %464 = vector.broadcast %cst_75 : f32 to vector<2x128xf32>
    %465 = arith.addf %464, %463 : vector<2x128xf32>
    %466 = arith.divf %464, %465 : vector<2x128xf32>
    %467 = arith.select %16, %461, %466 : vector<2x128xi1>, vector<2x128xf32>
    %468 = vector.extract_strided_slice %467 {offsets = [0, 0], sizes = [2, 32], strides = [1, 1]} : vector<2x128xf32> to vector<2x32xf32>
    %469 = vector.extract_strided_slice %467 {offsets = [0, 32], sizes = [2, 32], strides = [1, 1]} : vector<2x128xf32> to vector<2x32xf32>
    %470 = vector.extract_strided_slice %467 {offsets = [0, 64], sizes = [2, 32], strides = [1, 1]} : vector<2x128xf32> to vector<2x32xf32>
    %471 = vector.extract_strided_slice %467 {offsets = [0, 96], sizes = [2, 32], strides = [1, 1]} : vector<2x128xf32> to vector<2x32xf32>
    %472 = arith.mulf %469, %443 : vector<2x32xf32>
    %473 = arith.mulf %468, %470 : vector<2x32xf32>
    %474 = arith.addf %472, %473 : vector<2x32xf32>
    %475 = math.tanh %474 : vector<2x32xf32>
    %476 = arith.mulf %471, %475 : vector<2x32xf32>
    %477 = vector.broadcast %9 : vector<1x32xf32> to vector<2x32xf32>
    %478 = arith.mulf %476, %477 : vector<2x32xf32>
    %cst_76 = arith.constant dense<0.000000e+00> : vector<2xf32>
    %479 = vector.multi_reduction <add>, %478, %cst_76 [1] : vector<2x32xf32> to vector<2xf32>
    %480 = vector.shape_cast %479 : vector<2xf32> to vector<2x1xf32>
    %481 = vector.broadcast %10 : vector<1x1xf32> to vector<2x1xf32>
    %482 = arith.addf %480, %481 : vector<2x1xf32>
    %c0_77 = arith.constant 0 : index
    %c14 = arith.constant 14 : index
    %483 = vector.load %arg8[%c0_77, %c14] : memref<2x16xf32, #tpu.memory_space<vmem>>, vector<2x1xf32>
    tpu.vector_store %arg8[%c0_77, %c14], %482 {strides = array<i32>} : memref<2x16xf32, #tpu.memory_space<vmem>>, vector<2x1xf32>,
    %484 = vector.extract_strided_slice %5 {offsets = [0, 15], sizes = [2, 1], strides = [1, 1]} : vector<2x16xf32> to vector<2x1xf32>
    %485 = vector.broadcast %484 : vector<2x1xf32> to vector<2x128xf32>
    %486 = vector.broadcast %6 : vector<1x128xf32> to vector<2x128xf32>
    %487 = arith.mulf %485, %486 : vector<2x128xf32>
    %488 = vector.broadcast %8 : vector<1x128xf32> to vector<2x128xf32>
    %489 = arith.addf %487, %488 : vector<2x128xf32>
    %cst_78 = arith.constant dense<0.000000e+00> : vector<2x128xf32>
    %490 = tpu.matmul %476, %7, %cst_78 {dimension_numbers = #tpu.dot_dimension_numbers<[1], [0], [0], [1], [0, 0, 1, 1], [], []>} : vector<2x32xf32>, vector<32x128xf32>, vector<2x128xf32> -> vector<2x128xf32>
    %491 = arith.addf %489, %490 : vector<2x128xf32>
    %492 = math.tanh %491 : vector<2x128xf32>
    %493 = arith.negf %491 : vector<2x128xf32>
    %494 = math.exp %493 : vector<2x128xf32>
    %cst_79 = arith.constant 1.000000e+00 : f32
    %495 = vector.broadcast %cst_79 : f32 to vector<2x128xf32>
    %496 = arith.addf %495, %494 : vector<2x128xf32>
    %497 = arith.divf %495, %496 : vector<2x128xf32>
    %498 = arith.select %16, %492, %497 : vector<2x128xi1>, vector<2x128xf32>
    %499 = vector.extract_strided_slice %498 {offsets = [0, 0], sizes = [2, 32], strides = [1, 1]} : vector<2x128xf32> to vector<2x32xf32>
    %500 = vector.extract_strided_slice %498 {offsets = [0, 32], sizes = [2, 32], strides = [1, 1]} : vector<2x128xf32> to vector<2x32xf32>
    %501 = vector.extract_strided_slice %498 {offsets = [0, 64], sizes = [2, 32], strides = [1, 1]} : vector<2x128xf32> to vector<2x32xf32>
    %502 = vector.extract_strided_slice %498 {offsets = [0, 96], sizes = [2, 32], strides = [1, 1]} : vector<2x128xf32> to vector<2x32xf32>
    %503 = arith.mulf %500, %474 : vector<2x32xf32>
    %504 = arith.mulf %499, %501 : vector<2x32xf32>
    %505 = arith.addf %503, %504 : vector<2x32xf32>
    %506 = math.tanh %505 : vector<2x32xf32>
    %507 = arith.mulf %502, %506 : vector<2x32xf32>
    %508 = vector.broadcast %9 : vector<1x32xf32> to vector<2x32xf32>
    %509 = arith.mulf %507, %508 : vector<2x32xf32>
    %cst_80 = arith.constant dense<0.000000e+00> : vector<2xf32>
    %510 = vector.multi_reduction <add>, %509, %cst_80 [1] : vector<2x32xf32> to vector<2xf32>
    %511 = vector.shape_cast %510 : vector<2xf32> to vector<2x1xf32>
    %512 = vector.broadcast %10 : vector<1x1xf32> to vector<2x1xf32>
    %513 = arith.addf %511, %512 : vector<2x1xf32>
    %c0_81 = arith.constant 0 : index
    %c15 = arith.constant 15 : index
    %514 = vector.load %arg8[%c0_81, %c15] : memref<2x16xf32, #tpu.memory_space<vmem>>, vector<2x1xf32>
    tpu.vector_store %arg8[%c0_81, %c15], %513 {strides = array<i32>} : memref<2x16xf32, #tpu.memory_space<vmem>>, vector<2x1xf32>,
    return
  }
}

</mosaic_0001>

<bundles_post_ra>
// kernel: tpu_custom_call.1
= control target key start
LH: loop header
LB: loop body
LE: loop exit
PB: predicated region body
PF: predicated region fallthrough
CT: control target
= control target key end

     0   :  { %s3295_s0 = inlined_call_operand.vmem [shape: f32[2,8], index: 0, kind: input, shape index: {}]   ;;  %s3296_s1 = inlined_call_operand.hbm [shape: f32[8,16], index: 1, kind: input, shape index: {}]   ;;  %s3297_s2 = inlined_call_operand.vmem [shape: f32[1,16], index: 2, kind: input, shape index: {}]   ;;  %s3298_s3 = inlined_call_operand.vmem [shape: f32[1,128], index: 3, kind: input, shape index: {}]   ;;  %s3299_s4 = inlined_call_operand.hbm [shape: f32[32,128], index: 4, kind: input, shape index: {}]   ;;  %s3300_s5 = inlined_call_operand.vmem [shape: f32[1,128], index: 5, kind: input, shape index: {}]   ;;  %s3301_s6 = inlined_call_operand.vmem [shape: f32[1,32], index: 6, kind: input, shape index: {}]   ;;  %s3302_s7 = inlined_call_operand.<no memory space> [shape: f32[1,1], index: 7, kind: input, shape index: {}]   ;;  %s3303_s8 = inlined_call_operand.hbm [shape: f32[2,16], index: 8, kind: output, shape index: {}]  }
   0x1   :  { %v13_v0 = vstv %s3302_s7 }
   0x2   :  { %14 = vst [vmem:[#allocation2] sm:$0x1] %v13_v0 }
   0x3   :  { %15 = vsyncpa [#allocation4], 0 }
   0x4   :  { %16 = vsyncpa [#allocation7], 0 }
   0x5   :  { %17 = vsyncpa [#allocation5], 0  ;;  %s2701_s29 = smov [#allocation3]   ;;  %s2702_s9 = smov [#allocation6]  }
   0x6   :  { %s26_s30 = sshll.u32 %s2701_s29, 4  ;;  %s39_s10 = sshll.u32 %s2702_s9, 4  ;;  %s27_s30 = int_to_ptr.vmem [resolvable:$true] %s26_s30  ;;  %s40_s10 = int_to_ptr.vmem [resolvable:$true] %s39_s10 }
   0x7   :  { %s2643_s11 = scalar_lea.vmem %s27_s30, 128  ;;  %p2648_p1 = scmp.lt.s32.totalorder %s27_s30, %s27_s30 }
   0x8   :  { %p2644_p0 = scmp.ne.s32.totalorder %s27_s30, %s2643_s11  ;;  %p2649_p2 = scmp.lt.s32.totalorder %s2643_s11, %s2643_s11 }
   0xa   :  { %p2650_p3 = por %p2649_p2, %p2648_p1 }
   0xc   :  { %p2651_p4 = pnand %p2650_p3, %p2644_p0 }
   0xe   :  { %2654 = shalt.err (!%p2651_p4)
}
   0xf   :  { %29 = dma.hbm_to_vmem [thread:$0]  %s3296_s1, 128, %s27_s30, [#allocation4]  }
  0x10   :  { %s2663_s7 = scalar_lea.vmem %s40_s10, 512  ;;  %p2668_p6 = scmp.lt.s32.totalorder %s40_s10, %s40_s10 }
  0x11   :  { %p2664_p5 = scmp.ne.s32.totalorder %s40_s10, %s2663_s7  ;;  %p2669_p7 = scmp.lt.s32.totalorder %s2663_s7, %s2663_s7 }
  0x13   :  { %p2670_p8 = por %p2669_p7, %p2668_p6 }
  0x15   :  { %p2671_p9 = pnand %p2670_p8, %p2664_p5 }
  0x17   :  { %2674 = shalt.err (!%p2671_p9)
}
  0x18   :  { %s2703_s14 = smov 128   ;;  %s2704_s15 = smov 8  }
  0x19   :  { %45 = dma.hbm_to_vmem [thread:$0]  %s3299_s4, 512, %s40_s10, [#allocation7], %s2703_s14, %s2703_s14, %s2704_s15  }
  0x1a   :  { %2695 = dma.done.wait [#allocation4], 128  }
  0x1b   :  { %2696 = vsyncadd [#allocation4], 4294967168 }
  0x1c   :  { %2697 = dma.done.wait [#allocation7], 512  }
  0x1d   :  { %2698 = vsyncadd [#allocation7], 4294966784  ;;  %v2705_v1 = vmov 0.0   ;;  %vm2706_vm0 = vmmov 0   ;;  %vm67_vm1 = vcmask 64512   ;;  %v59_v2 = vld [vmem:[#allocation3] sm:$0xff]  ;;  %v149_v24 = vlaneseq }
  0x1e   :  { %2264 = vmatprep.subr.mxu0 %v2705_v1  ;;  %2266 = vmatprep.mubr.msk.f32.mxu0 %vm2706_vm0, %v2705_v1  ;;  %v58_v3 = vld [vmem:[%s3295_s0] sm:$0x3]  ;;  %v2811_v6 = vld [vmem:[#allocation6 + $0x8] sm:$0xff]  ;;  %v2816_v7 = vld [vmem:[#allocation6] sm:$0xff]  ;;  %v2707_v8 = vmov 0   ;;  %s2709_s23 = smov 32  }
  0x1f   :  { %2269 = vmatprep.subr.mxu1 %v2705_v1  ;;  %2277 = vmatprep.mubr.msk.f32.mxu1 %vm2706_vm0, %v2705_v1  ;;  %v2805_v4 = vld [vmem:[#allocation6 + $0x18] sm:$0xff]  ;;  %v2808_v5 = vld [vmem:[#allocation6 + $0x10] sm:$0xff]  ;;  %v150_v25 = vand.u32 127, %v149_v24  ;;  %v2710_v32 = vmov 1   ;;  %vm173_vm5 = vcmask 261120   ;;  %v2711_v54 = vmov 2  }
  0x20   :  { %2265 = vmatpush3.msra.mxu0 %v59_v2  ;;  %2270 = vmatpush3.msra.mxu1 %v2805_v4  ;;  %v2145_v9 = vld [vmem:[%s3297_s2] ss:$0 sm:$0xff]  ;;  %s2708_s2 = smov 64   ;;  %s2725_s28 = smov 96   ;;  %vm286_vm6 = vcmask 254976   ;;  %vm297_vm7 = vcmask 1024  }
  0x21   :  { %2267 = vmatmul.mubr.msk.f32.vlgmr.msra.gmra.mxu0 %vm67_vm1, %v58_v3  ;;  %2271 = vmatprep.subr.mxu1 %v2705_v1  ;;  %v2852_v15 = vld [vmem:[%s3298_s3] ss:$0 sm:$0xff]  ;;  %vm151_vm2 = vcmp.ge.s32.totalorder %v150_v25, 64  ;;  %vm152_vm3 = vcmp.lt.s32.totalorder %v150_v25, 96  ;;  %vm419_vm8 = vcmask 9224   ;;  %s2727_s29 = smov 2  }
  0x22   :  { %2272 = vmatpush3.msra.mxu1 %v2808_v5  ;;  %2280 = vmatprep.subr.mxu0 %v2705_v1  ;;  %v2857_v17 = vld [vmem:[%s3300_s5] ss:$0 sm:$0xff]  ;;  %vm2861_vm4 = vmand %vm151_vm2, %vm152_vm3  ;;  %vm541_vm9 = vcmask 17424   ;;  %s2728_s30 = smov 3   ;;  %s2729_s9 = smov 4   ;;  %vm663_vm10 = vcmask 25624  }
  0x23   :  { %2273 = vmatprep.subr.mxu1 %v2705_v1  ;;  %2281 = vmatpush3.msra.mxu0 %v2805_v4  ;;  %vm785_vm11 = vcmask 33824   ;;  %s2730_s10 = smov 5   ;;  %s2731_s11 = smov 6   ;;  %vm907_vm12 = vcmask 42024   ;;  %vm1029_vm13 = vcmask 50224   ;;  %vm1151_vm14 = vcmask 58424  }
  0x24   :  { %2274 = vmatpush3.msra.mxu1 %v2811_v6  ;;  %2282 = vmatprep.subr.mxu0 %v2705_v1  ;;  %s2732_s12 = smov 7   ;;  %vm1273_vm15 = vcmask 66624   ;;  %s2733_s13 = smov 9   ;;  %vm1517_vm1 = vcmask 83024   ;;  %vm1639_vm2 = vcmask 91224   ;;  %vm1761_vm3 = vcmask 99424  }
  0x25   :  { %2275 = vmatprep.subr.mxu1 %v2705_v1  ;;  %2283 = vmatpush3.msra.mxu0 %v2808_v5  ;;  %s2734_s7 = smov 10   ;;  %s2735_s14 = smov 12  }
  0x26   :  { %2276 = vmatpush3.msra.mxu1 %v2816_v7  ;;  %2284 = vmatprep.subr.mxu0 %v2705_v1  ;;  %s2737_s16 = smov 11   ;;  %s2738_s17 = smov 13  }
  0x27   :  { %2278 = vmatmul.mubr.f32.vlgmr.msra.gmra.mxu1 %v2705_v1  ;;  %2285 = vmatpush3.msra.mxu0 %v2811_v6  ;;  %s2739_s1 = smov 14   ;;  %s2740_s4 = smov [#allocation8]  }
  0x28   :  { %2286 = vmatprep.subr.mxu0 %v2705_v1  ;;  %2288 = vmatprep.mubr.msk.f32.mxu0 %vm2706_vm0, %v2705_v1  ;;  %s2135_s0 = sshll.u32 %s2740_s4, 4  ;;  %s2136_s0 = int_to_ptr.vmem [resolvable:$true] %s2135_s0 }
  0x29   :  { %2287 = vmatpush3.msra.mxu0 %v2816_v7  ;;  %2291 = vmatprep.subr.mxu1 %v2705_v1  ;;  %s2675_s18 = scalar_lea.vmem %s2136_s0, 32  ;;  %p2680_p11 = scmp.lt.s32.totalorder %s2136_s0, %s2136_s0 }
  0x2a   :  { %2292 = vmatpush3.msra.mxu1 %v2805_v4  ;;  %2299 = vmatprep.mubr.msk.f32.mxu1 %vm2706_vm0, %v2705_v1  ;;  %p2676_p10 = scmp.ne.s32.totalorder %s2136_s0, %s2675_s18  ;;  %p2681_p12 = scmp.lt.s32.totalorder %s2675_s18, %s2675_s18 }
  0x2b   :  { %2293 = vmatprep.subr.mxu1 %v2705_v1  ;;  %2302 = vmatprep.subr.mxu0 %v2705_v1 }
  0x2c   :  { %2294 = vmatpush3.msra.mxu1 %v2808_v5  ;;  %2485 = vset.pattern.permute.xlu0 %v2707_v8  ;;  %p2682_p13 = por %p2681_p12, %p2680_p11 }
  0x2d   :  { %2295 = vmatprep.subr.mxu1 %v2705_v1  ;;  %2486 = vset.pattern.permute.xlu1 %v2710_v32 }
  0x2e   :  { %2296 = vmatpush3.msra.mxu1 %v2811_v6  ;;  %p2683_p0 = pnand %p2682_p13, %p2676_p10 }
  0x2f   :  { %2297 = vmatprep.subr.mxu1 %v2705_v1 }
  0x30   :  { %2298 = vmatpush3.msra.mxu1 %v2816_v7 }
  0x31   :  { %2313 = vmatprep.subr.mxu1 %v2705_v1 }
  0xe1   :  { %v137_v10 = vpop.f32.mrf.mxu0 }
  0xe2   :  { %v2846_v11 = vadd.f32 %v2145_v9, %v137_v10 }
  0xe3   :  { %v2268_v12 = vpop.f32.mrf.mxu0 }
  0xe4   :  { %156 = vperm.xlu0 %2485, %v2846_v11  }
  0xe7   :  { %v243_v13 = vpop.f32.mrf.mxu1 }
  0xe8   :  { %2487 = vset.pattern.permute.xlu0 %v2711_v54 }
  0xe9   :  { %v2279_v14 = vpop.f32.mrf.mxu1 }
 0x15f   :  { %v157_v16 = vpop.permute.xlu0 %156 }
 0x160   :  { %v165_v18 = vmul.f32 %v2852_v15, %v157_v16 }
 0x162   :  { %v172_v19 = vadd.f32 %v2857_v17, %v165_v18 }
 0x164   :  { %v247_v20 = vadd.f32 %v243_v13, %v172_v19 }
 0x166   :  { %v2149_v21 = vmul.f32 -1.442695, %v247_v20 }
 0x168   :  { %2501 = vpow2.f32 %v2149_v21 }
 0x169   :  { %2503 = vtanh.f32 %v247_v20  ;;  %v2712_v20 = vmov 3  }
 0x175   :  { %v2502_v22 = vpop.eup %2501 }
 0x176   :  { %v252_v23 = vadd.f32 1.0, %v2502_v22  ;;  %v2504_v27 = vpop.eup %2503 }
 0x178   :  { %2505 = vrcp.f32 %v252_v23 }
 0x185   :  { %v2506_v28 = vpop.eup %2505 }
 0x186   :  { %v255_v29 = vsel %vm2861_vm4, %v2504_v27, %v2506_v28 }
 0x187   :  { %258 = vrot.lane.b32.xlu0 %v255_v29, %s2708_s2  ;;  %v256_v33 = vmul.f32 0.0, %v255_v29 }
 0x1f9   :  { %v259_v30 = vpop.permute.xlu0 %258 }
 0x1fa   :  { %v261_v31 = vmul.f32 %v259_v30, %v255_v29 }
 0x1fc   :  { %263 = vrot.lane.b32.xlu1 %v261_v31, %s2709_s23 }
 0x26e   :  { %v264_v34 = vpop.permute.xlu1 %263 }
 0x26f   :  { %v266_v35 = vadd.f32 %v264_v34, %v256_v33 }
 0x271   :  { %2507 = vtanh.f32 %v266_v35 }
 0x27e   :  { %v2508_v36 = vpop.eup %2507 }
 0x27f   :  { %269 = vrot.lane.b32.xlu1 %v2508_v36, %s2708_s2 }
 0x283   :  { %300 = vperm.xlu1 %2486, %v2846_v11  }
 0x2f1   :  { %v270_v37 = vpop.permute.xlu1 %269 }
 0x2f2   :  { %v2871_v38 = vmul.f32 %v270_v37, %v255_v29 }
 0x2f4   :  { %306 = vrot.lane.b32.xlu0 %v2871_v38, %s2709_s23 }
 0x2fe   :  { %v301_v40 = vpop.permute.xlu1 %300 }
 0x2ff   :  { %v303_v41 = vmul.f32 %v2852_v15, %v301_v40 }
 0x301   :  { %v304_v42 = vadd.f32 %v2857_v17, %v303_v41 }
 0x366   :  { %v307_v39 = vpop.permute.xlu0 %306 }
 0x367   :  { %2289 = vmatmul.mubr.msk.f32.vlgmr.msra.gmra.mxu0 %vm173_vm5, %v307_v39 }
 0x368   :  { %2303 = vmatpush3.msra.mxu0 %v2805_v4  ;;  %2310 = vmatprep.mubr.msk.f32.mxu0 %vm2706_vm0, %v2705_v1 }
 0x369   :  { %2304 = vmatprep.subr.mxu0 %v2705_v1 }
 0x36a   :  { %2305 = vmatpush3.msra.mxu0 %v2808_v5 }
 0x36b   :  { %2306 = vmatprep.subr.mxu0 %v2705_v1 }
 0x36c   :  { %2307 = vmatpush3.msra.mxu0 %v2811_v6 }
 0x36d   :  { %2308 = vmatprep.subr.mxu0 %v2705_v1 }
 0x36e   :  { %2309 = vmatpush3.msra.mxu0 %v2816_v7 }
 0x36f   :  { %2324 = vmatprep.subr.mxu0 %v2705_v1 }
 0x427   :  { %v376_v43 = vpop.f32.mrf.mxu0 }
 0x428   :  { %v380_v44 = vadd.f32 %v376_v43, %v304_v42 }
 0x429   :  { %v2290_v45 = vpop.f32.mrf.mxu0 }
 0x42a   :  { %v2153_v46 = vmul.f32 -1.442695, %v380_v44 }
 0x42c   :  { %2509 = vpow2.f32 %v2153_v46 }
 0x42d   :  { %2511 = vtanh.f32 %v380_v44  ;;  %v2713_v44 = vmov 4  }
 0x439   :  { %v2510_v47 = vpop.eup %2509 }
 0x43a   :  { %v385_v48 = vadd.f32 1.0, %v2510_v47  ;;  %v2512_v49 = vpop.eup %2511 }
 0x43c   :  { %2513 = vrcp.f32 %v385_v48 }
 0x449   :  { %v2514_v50 = vpop.eup %2513 }
 0x44a   :  { %v388_v51 = vsel %vm2861_vm4, %v2512_v49, %v2514_v50 }
 0x44b   :  { %391 = vrot.lane.b32.xlu0 %v388_v51, %s2708_s2  ;;  %v389_v55 = vmul.f32 %v388_v51, %v266_v35 }
 0x4bd   :  { %v392_v52 = vpop.permute.xlu0 %391 }
 0x4be   :  { %v394_v53 = vmul.f32 %v392_v52, %v388_v51 }
 0x4c0   :  { %396 = vrot.lane.b32.xlu1 %v394_v53, %s2709_s23 }
 0x532   :  { %v397_v56 = vpop.permute.xlu1 %396 }
 0x533   :  { %v399_v57 = vadd.f32 %v397_v56, %v389_v55 }
 0x535   :  { %2515 = vtanh.f32 %v399_v57 }
 0x542   :  { %v2516_v58 = vpop.eup %2515 }
 0x543   :  { %402 = vrot.lane.b32.xlu0 %v2516_v58, %s2708_s2 }
 0x547   :  { %422 = vperm.xlu0 %2487, %v2846_v11  }
 0x54b   :  { %2488 = vset.pattern.permute.xlu0 %v2712_v20 }
 0x5b5   :  { %v403_v59 = vpop.permute.xlu0 %402 }
 0x5b6   :  { %v2894_v60 = vmul.f32 %v403_v59, %v388_v51 }
 0x5b8   :  { %428 = vrot.lane.b32.xlu1 %v2894_v60, %s2709_s23 }
 0x5c2   :  { %v423_v62 = vpop.permute.xlu0 %422 }
 0x5c3   :  { %v425_v63 = vmul.f32 %v2852_v15, %v423_v62 }
 0x5c5   :  { %v426_v0 = vadd.f32 %v2857_v17, %v425_v63 }
 0x62a   :  { %v429_v61 = vpop.permute.xlu1 %428 }
 0x62b   :  { %2300 = vmatmul.mubr.msk.f32.vlgmr.msra.gmra.mxu1 %vm173_vm5, %v429_v61 }
 0x62c   :  { %2314 = vmatpush3.msra.mxu1 %v2805_v4  ;;  %2321 = vmatprep.mubr.msk.f32.mxu1 %vm2706_vm0, %v2705_v1 }
 0x62d   :  { %2315 = vmatprep.subr.mxu1 %v2705_v1 }
 0x62e   :  { %2316 = vmatpush3.msra.mxu1 %v2808_v5 }
 0x62f   :  { %2317 = vmatprep.subr.mxu1 %v2705_v1 }
 0x630   :  { %2318 = vmatpush3.msra.mxu1 %v2811_v6 }
 0x631   :  { %2319 = vmatprep.subr.mxu1 %v2705_v1 }
 0x632   :  { %2320 = vmatpush3.msra.mxu1 %v2816_v7 }
 0x633   :  { %2335 = vmatprep.subr.mxu1 %v2705_v1 }
 0x6eb   :  { %v498_v2 = vpop.f32.mrf.mxu1 }
 0x6ec   :  { %v502_v3 = vadd.f32 %v498_v2, %v426_v0 }
 0x6ed   :  { %v2301_v8 = vpop.f32.mrf.mxu1 }
 0x6ee   :  { %v2155_v9 = vmul.f32 -1.442695, %v502_v3  ;;  %v2714_v8 = vmov 5  }
 0x6f0   :  { %2517 = vpow2.f32 %v2155_v9 }
 0x6f1   :  { %2519 = vtanh.f32 %v502_v3 }
 0x6fd   :  { %v2518_v10 = vpop.eup %2517 }
 0x6fe   :  { %v507_v12 = vadd.f32 1.0, %v2518_v10  ;;  %v2520_v13 = vpop.eup %2519 }
 0x700   :  { %2521 = vrcp.f32 %v507_v12 }
 0x70d   :  { %v2522_v14 = vpop.eup %2521 }
 0x70e   :  { %v510_v16 = vsel %vm2861_vm4, %v2520_v13, %v2522_v14 }
 0x70f   :  { %513 = vrot.lane.b32.xlu1 %v510_v16, %s2708_s2  ;;  %v511_v21 = vmul.f32 %v510_v16, %v399_v57 }
 0x781   :  { %v514_v18 = vpop.permute.xlu1 %513 }
 0x782   :  { %v516_v19 = vmul.f32 %v514_v18, %v510_v16 }
 0x784   :  { %518 = vrot.lane.b32.xlu1 %v516_v19, %s2709_s23 }
 0x7f6   :  { %v519_v22 = vpop.permute.xlu1 %518 }
 0x7f7   :  { %v521_v23 = vadd.f32 %v519_v22, %v511_v21 }
 0x7f9   :  { %2523 = vtanh.f32 %v521_v23 }
 0x806   :  { %v2524_v24 = vpop.eup %2523 }
 0x807   :  { %524 = vrot.lane.b32.xlu0 %v2524_v24, %s2708_s2 }
 0x80b   :  { %544 = vperm.xlu0 %2488, %v2846_v11  }
 0x80f   :  { %2489 = vset.pattern.permute.xlu0 %v2713_v44 }
 0x879   :  { %v525_v25 = vpop.permute.xlu0 %524 }
 0x87a   :  { %v2917_v27 = vmul.f32 %v525_v25, %v510_v16 }
 0x87c   :  { %550 = vrot.lane.b32.xlu1 %v2917_v27, %s2709_s23 }
 0x886   :  { %v545_v29 = vpop.permute.xlu0 %544 }
 0x887   :  { %v547_v30 = vmul.f32 %v2852_v15, %v545_v29 }
 0x889   :  { %v548_v31 = vadd.f32 %v2857_v17, %v547_v30 }
 0x8ee   :  { %v551_v28 = vpop.permute.xlu1 %550 }
 0x8ef   :  { %2311 = vmatmul.mubr.msk.f32.vlgmr.msra.gmra.mxu0 %vm173_vm5, %v551_v28 }
 0x8f0   :  { %2325 = vmatpush3.msra.mxu0 %v2805_v4  ;;  %2332 = vmatprep.mubr.msk.f32.mxu0 %vm2706_vm0, %v2705_v1 }
 0x8f1   :  { %2326 = vmatprep.subr.mxu0 %v2705_v1 }
 0x8f2   :  { %2327 = vmatpush3.msra.mxu0 %v2808_v5 }
 0x8f3   :  { %2328 = vmatprep.subr.mxu0 %v2705_v1 }
 0x8f4   :  { %2329 = vmatpush3.msra.mxu0 %v2811_v6 }
 0x8f5   :  { %2330 = vmatprep.subr.mxu0 %v2705_v1 }
 0x8f6   :  { %2331 = vmatpush3.msra.mxu0 %v2816_v7 }
 0x8f7   :  { %2346 = vmatprep.subr.mxu0 %v2705_v1 }
 0x9af   :  { %v620_v32 = vpop.f32.mrf.mxu0 }
 0x9b0   :  { %v624_v33 = vadd.f32 %v620_v32, %v548_v31 }
 0x9b1   :  { %v2312_v34 = vpop.f32.mrf.mxu0 }
 0x9b2   :  { %v2157_v35 = vmul.f32 -1.442695, %v624_v33 }
 0x9b4   :  { %2525 = vpow2.f32 %v2157_v35  ;;  %v2715_v35 = vmov 6  }
 0x9b5   :  { %2527 = vtanh.f32 %v624_v33 }
 0x9c1   :  { %v2526_v36 = vpop.eup %2525 }
 0x9c2   :  { %v629_v37 = vadd.f32 1.0, %v2526_v36  ;;  %v2528_v39 = vpop.eup %2527 }
 0x9c4   :  { %2529 = vrcp.f32 %v629_v37 }
 0x9d1   :  { %v2530_v40 = vpop.eup %2529 }
 0x9d2   :  { %v632_v41 = vsel %vm2861_vm4, %v2528_v39, %v2530_v40 }
 0x9d3   :  { %635 = vrot.lane.b32.xlu1 %v632_v41, %s2708_s2  ;;  %v633_v45 = vmul.f32 %v632_v41, %v521_v23 }
 0xa45   :  { %v636_v42 = vpop.permute.xlu1 %635 }
 0xa46   :  { %v638_v43 = vmul.f32 %v636_v42, %v632_v41 }
 0xa48   :  { %640 = vrot.lane.b32.xlu1 %v638_v43, %s2709_s23 }
 0xaba   :  { %v641_v46 = vpop.permute.xlu1 %640 }
 0xabb   :  { %v643_v47 = vadd.f32 %v641_v46, %v633_v45 }
 0xabd   :  { %2531 = vtanh.f32 %v643_v47 }
 0xaca   :  { %v2532_v48 = vpop.eup %2531 }
 0xacb   :  { %646 = vrot.lane.b32.xlu0 %v2532_v48, %s2708_s2 }
 0xacf   :  { %666 = vperm.xlu0 %2489, %v2846_v11  }
 0xad3   :  { %2490 = vset.pattern.permute.xlu0 %v2714_v8 }
 0xb3d   :  { %v647_v49 = vpop.permute.xlu0 %646 }
 0xb3e   :  { %v2940_v50 = vmul.f32 %v647_v49, %v632_v41 }
 0xb40   :  { %672 = vrot.lane.b32.xlu1 %v2940_v50, %s2709_s23 }
 0xb4a   :  { %v667_v52 = vpop.permute.xlu0 %666 }
 0xb4b   :  { %v669_v53 = vmul.f32 %v2852_v15, %v667_v52 }
 0xb4d   :  { %v670_v54 = vadd.f32 %v2857_v17, %v669_v53 }
 0xbb2   :  { %v673_v51 = vpop.permute.xlu1 %672 }
 0xbb3   :  { %2322 = vmatmul.mubr.msk.f32.vlgmr.msra.gmra.mxu1 %vm173_vm5, %v673_v51 }
 0xbb4   :  { %2336 = vmatpush3.msra.mxu1 %v2805_v4  ;;  %2343 = vmatprep.mubr.msk.f32.mxu1 %vm2706_vm0, %v2705_v1 }
 0xbb5   :  { %2337 = vmatprep.subr.mxu1 %v2705_v1 }
 0xbb6   :  { %2338 = vmatpush3.msra.mxu1 %v2808_v5 }
 0xbb7   :  { %2339 = vmatprep.subr.mxu1 %v2705_v1 }
 0xbb8   :  { %2340 = vmatpush3.msra.mxu1 %v2811_v6 }
 0xbb9   :  { %2341 = vmatprep.subr.mxu1 %v2705_v1 }
 0xbba   :  { %2342 = vmatpush3.msra.mxu1 %v2816_v7 }
 0xbbb   :  { %2357 = vmatprep.subr.mxu1 %v2705_v1 }
 0xc73   :  { %v742_v55 = vpop.f32.mrf.mxu1 }
 0xc74   :  { %v746_v56 = vadd.f32 %v742_v55, %v670_v54 }
 0xc75   :  { %v2323_v57 = vpop.f32.mrf.mxu1 }
 0xc76   :  { %v2159_v58 = vmul.f32 -1.442695, %v746_v56 }
 0xc78   :  { %2533 = vpow2.f32 %v2159_v58 }
 0xc79   :  { %2535 = vtanh.f32 %v746_v56 }
 0xc85   :  { %v2534_v59 = vpop.eup %2533 }
 0xc86   :  { %v751_v61 = vadd.f32 1.0, %v2534_v59  ;;  %v2536_v62 = vpop.eup %2535  ;;  %v2716_v59 = vmov 7  }
 0xc88   :  { %2537 = vrcp.f32 %v751_v61 }
 0xc95   :  { %v2538_v63 = vpop.eup %2537 }
 0xc96   :  { %v754_v0 = vsel %vm2861_vm4, %v2536_v62, %v2538_v63 }
 0xc97   :  { %757 = vrot.lane.b32.xlu1 %v754_v0, %s2708_s2  ;;  %v755_v9 = vmul.f32 %v754_v0, %v643_v47 }
 0xd09   :  { %v758_v2 = vpop.permute.xlu1 %757 }
 0xd0a   :  { %v760_v3 = vmul.f32 %v758_v2, %v754_v0 }
 0xd0c   :  { %762 = vrot.lane.b32.xlu1 %v760_v3, %s2709_s23 }
 0xd7e   :  { %v763_v10 = vpop.permute.xlu1 %762 }
 0xd7f   :  { %v765_v12 = vadd.f32 %v763_v10, %v755_v9 }
 0xd81   :  { %2539 = vtanh.f32 %v765_v12 }
 0xd8e   :  { %v2540_v13 = vpop.eup %2539 }
 0xd8f   :  { %768 = vrot.lane.b32.xlu0 %v2540_v13, %s2708_s2 }
 0xd93   :  { %788 = vperm.xlu0 %2490, %v2846_v11  }
 0xd97   :  { %2491 = vset.pattern.permute.xlu0 %v2715_v35 }
 0xe01   :  { %v769_v14 = vpop.permute.xlu0 %768 }
 0xe02   :  { %v2963_v16 = vmul.f32 %v769_v14, %v754_v0 }
 0xe04   :  { %794 = vrot.lane.b32.xlu1 %v2963_v16, %s2709_s23 }
 0xe0e   :  { %v789_v19 = vpop.permute.xlu0 %788 }
 0xe0f   :  { %v791_v20 = vmul.f32 %v2852_v15, %v789_v19 }
 0xe11   :  { %v792_v21 = vadd.f32 %v2857_v17, %v791_v20 }
 0xe76   :  { %v795_v18 = vpop.permute.xlu1 %794 }
 0xe77   :  { %2333 = vmatmul.mubr.msk.f32.vlgmr.msra.gmra.mxu0 %vm173_vm5, %v795_v18 }
 0xe78   :  { %2347 = vmatpush3.msra.mxu0 %v2805_v4  ;;  %2354 = vmatprep.mubr.msk.f32.mxu0 %vm2706_vm0, %v2705_v1 }
 0xe79   :  { %2348 = vmatprep.subr.mxu0 %v2705_v1 }
 0xe7a   :  { %2349 = vmatpush3.msra.mxu0 %v2808_v5 }
 0xe7b   :  { %2350 = vmatprep.subr.mxu0 %v2705_v1 }
 0xe7c   :  { %2351 = vmatpush3.msra.mxu0 %v2811_v6 }
 0xe7d   :  { %2352 = vmatprep.subr.mxu0 %v2705_v1 }
 0xe7e   :  { %2353 = vmatpush3.msra.mxu0 %v2816_v7 }
 0xe7f   :  { %2368 = vmatprep.subr.mxu0 %v2705_v1 }
 0xf37   :  { %v864_v22 = vpop.f32.mrf.mxu0 }
 0xf38   :  { %v868_v23 = vadd.f32 %v864_v22, %v792_v21 }
 0xf39   :  { %v2334_v24 = vpop.f32.mrf.mxu0 }
 0xf3a   :  { %v2161_v25 = vmul.f32 -1.442695, %v868_v23 }
 0xf3c   :  { %2541 = vpow2.f32 %v2161_v25 }
 0xf3d   :  { %2543 = vtanh.f32 %v868_v23 }
 0xf49   :  { %v2542_v28 = vpop.eup %2541 }
 0xf4a   :  { %v873_v29 = vadd.f32 1.0, %v2542_v28  ;;  %v2544_v30 = vpop.eup %2543 }
 0xf4c   :  { %2545 = vrcp.f32 %v873_v29  ;;  %v2717_v29 = vmov 8  }
 0xf59   :  { %v2546_v31 = vpop.eup %2545 }
 0xf5a   :  { %v876_v32 = vsel %vm2861_vm4, %v2544_v30, %v2546_v31 }
 0xf5b   :  { %879 = vrot.lane.b32.xlu1 %v876_v32, %s2708_s2  ;;  %v877_v36 = vmul.f32 %v876_v32, %v765_v12 }
 0xfcd   :  { %v880_v33 = vpop.permute.xlu1 %879 }
 0xfce   :  { %v882_v34 = vmul.f32 %v880_v33, %v876_v32 }
 0xfd0   :  { %884 = vrot.lane.b32.xlu1 %v882_v34, %s2709_s23 }
0x1042   :  { %v885_v37 = vpop.permute.xlu1 %884 }
0x1043   :  { %v887_v39 = vadd.f32 %v885_v37, %v877_v36 }
0x1045   :  { %2547 = vtanh.f32 %v887_v39 }
0x1052   :  { %v2548_v40 = vpop.eup %2547 }
0x1053   :  { %890 = vrot.lane.b32.xlu0 %v2548_v40, %s2708_s2 }
0x1057   :  { %910 = vperm.xlu0 %2491, %v2846_v11  }
0x105b   :  { %2492 = vset.pattern.permute.xlu0 %v2716_v59 }
0x10c5   :  { %v891_v41 = vpop.permute.xlu0 %890 }
0x10c6   :  { %v2986_v42 = vmul.f32 %v891_v41, %v876_v32 }
0x10c8   :  { %916 = vrot.lane.b32.xlu1 %v2986_v42, %s2709_s23 }
0x10d2   :  { %v911_v44 = vpop.permute.xlu0 %910 }
0x10d3   :  { %v913_v45 = vmul.f32 %v2852_v15, %v911_v44 }
0x10d5   :  { %v914_v46 = vadd.f32 %v2857_v17, %v913_v45 }
0x113a   :  { %v917_v43 = vpop.permute.xlu1 %916 }
0x113b   :  { %2344 = vmatmul.mubr.msk.f32.vlgmr.msra.gmra.mxu1 %vm173_vm5, %v917_v43 }
0x113c   :  { %2358 = vmatpush3.msra.mxu1 %v2805_v4  ;;  %2365 = vmatprep.mubr.msk.f32.mxu1 %vm2706_vm0, %v2705_v1 }
0x113d   :  { %2359 = vmatprep.subr.mxu1 %v2705_v1 }
0x113e   :  { %2360 = vmatpush3.msra.mxu1 %v2808_v5 }
0x113f   :  { %2361 = vmatprep.subr.mxu1 %v2705_v1 }
0x1140   :  { %2362 = vmatpush3.msra.mxu1 %v2811_v6 }
0x1141   :  { %2363 = vmatprep.subr.mxu1 %v2705_v1 }
0x1142   :  { %2364 = vmatpush3.msra.mxu1 %v2816_v7 }
0x1143   :  { %2379 = vmatprep.subr.mxu1 %v2705_v1 }
0x11fb   :  { %v986_v47 = vpop.f32.mrf.mxu1 }
0x11fc   :  { %v990_v48 = vadd.f32 %v986_v47, %v914_v46 }
0x11fd   :  { %v2345_v49 = vpop.f32.mrf.mxu1 }
0x11fe   :  { %v2163_v51 = vmul.f32 -1.442695, %v990_v48 }
0x1200   :  { %2549 = vpow2.f32 %v2163_v51 }
0x1201   :  { %2551 = vtanh.f32 %v990_v48 }
0x120d   :  { %v2550_v52 = vpop.eup %2549 }
0x120e   :  { %v995_v53 = vadd.f32 1.0, %v2550_v52  ;;  %v2552_v54 = vpop.eup %2551 }
0x1210   :  { %2553 = vrcp.f32 %v995_v53 }
0x121d   :  { %v2554_v55 = vpop.eup %2553 }
0x121e   :  { %v998_v56 = vsel %vm2861_vm4, %v2552_v54, %v2554_v55  ;;  %v2718_v54 = vmov 9  }
0x121f   :  { %1001 = vrot.lane.b32.xlu1 %v998_v56, %s2708_s2  ;;  %v999_v61 = vmul.f32 %v998_v56, %v887_v39 }
0x1291   :  { %v1002_v57 = vpop.permute.xlu1 %1001 }
0x1292   :  { %v1004_v58 = vmul.f32 %v1002_v57, %v998_v56 }
0x1294   :  { %1006 = vrot.lane.b32.xlu1 %v1004_v58, %s2709_s23 }
0x1306   :  { %v1007_v62 = vpop.permute.xlu1 %1006 }
0x1307   :  { %v1009_v63 = vadd.f32 %v1007_v62, %v999_v61 }
0x1309   :  { %2555 = vtanh.f32 %v1009_v63 }
0x1316   :  { %v2556_v0 = vpop.eup %2555 }
0x1317   :  { %1012 = vrot.lane.b32.xlu0 %v2556_v0, %s2708_s2 }
0x131b   :  { %1032 = vperm.xlu0 %2492, %v2846_v11  }
0x131f   :  { %2493 = vset.pattern.permute.xlu0 %v2717_v29 }
0x1389   :  { %v1013_v2 = vpop.permute.xlu0 %1012 }
0x138a   :  { %v3009_v3 = vmul.f32 %v1013_v2, %v998_v56 }
0x138c   :  { %1038 = vrot.lane.b32.xlu1 %v3009_v3, %s2709_s23 }
0x1396   :  { %v1033_v9 = vpop.permute.xlu0 %1032 }
0x1397   :  { %v1035_v10 = vmul.f32 %v2852_v15, %v1033_v9 }
0x1399   :  { %v1036_v12 = vadd.f32 %v2857_v17, %v1035_v10 }
0x13fe   :  { %v1039_v8 = vpop.permute.xlu1 %1038 }
0x13ff   :  { %2355 = vmatmul.mubr.msk.f32.vlgmr.msra.gmra.mxu0 %vm173_vm5, %v1039_v8 }
0x1400   :  { %2369 = vmatpush3.msra.mxu0 %v2805_v4  ;;  %2376 = vmatprep.mubr.msk.f32.mxu0 %vm2706_vm0, %v2705_v1 }
0x1401   :  { %2370 = vmatprep.subr.mxu0 %v2705_v1 }
0x1402   :  { %2371 = vmatpush3.msra.mxu0 %v2808_v5 }
0x1403   :  { %2372 = vmatprep.subr.mxu0 %v2705_v1 }
0x1404   :  { %2373 = vmatpush3.msra.mxu0 %v2811_v6 }
0x1405   :  { %2374 = vmatprep.subr.mxu0 %v2705_v1 }
0x1406   :  { %2375 = vmatpush3.msra.mxu0 %v2816_v7 }
0x1407   :  { %2390 = vmatprep.subr.mxu0 %v2705_v1 }
0x14bf   :  { %v1108_v13 = vpop.f32.mrf.mxu0 }
0x14c0   :  { %v1112_v14 = vadd.f32 %v1108_v13, %v1036_v12 }
0x14c1   :  { %v2356_v18 = vpop.f32.mrf.mxu0 }
0x14c2   :  { %v2165_v19 = vmul.f32 -1.442695, %v1112_v14 }
0x14c4   :  { %2557 = vpow2.f32 %v2165_v19 }
0x14c5   :  { %2559 = vtanh.f32 %v1112_v14 }
0x14d1   :  { %v2558_v20 = vpop.eup %2557 }
0x14d2   :  { %v1117_v21 = vadd.f32 1.0, %v2558_v20  ;;  %v2560_v22 = vpop.eup %2559 }
0x14d4   :  { %2561 = vrcp.f32 %v1117_v21 }
0x14e1   :  { %v2562_v23 = vpop.eup %2561 }
0x14e2   :  { %v1120_v24 = vsel %vm2861_vm4, %v2560_v22, %v2562_v23  ;;  %v2719_v23 = vmov 10  }
0x14e3   :  { %1123 = vrot.lane.b32.xlu1 %v1120_v24, %s2708_s2  ;;  %v1121_v30 = vmul.f32 %v1120_v24, %v1009_v63 }
0x1555   :  { %v1124_v25 = vpop.permute.xlu1 %1123 }
0x1556   :  { %v1126_v28 = vmul.f32 %v1124_v25, %v1120_v24 }
0x1558   :  { %1128 = vrot.lane.b32.xlu1 %v1126_v28, %s2709_s23 }
0x15ca   :  { %v1129_v31 = vpop.permute.xlu1 %1128 }
0x15cb   :  { %v1131_v32 = vadd.f32 %v1129_v31, %v1121_v30 }
0x15cd   :  { %2563 = vtanh.f32 %v1131_v32 }
0x15da   :  { %v2564_v33 = vpop.eup %2563 }
0x15db   :  { %1134 = vrot.lane.b32.xlu0 %v2564_v33, %s2708_s2 }
0x15df   :  { %1154 = vperm.xlu0 %2493, %v2846_v11  }
0x15e3   :  { %2494 = vset.pattern.permute.xlu0 %v2718_v54 }
0x164d   :  { %v1135_v34 = vpop.permute.xlu0 %1134 }
0x164e   :  { %v3032_v35 = vmul.f32 %v1135_v34, %v1120_v24 }
0x1650   :  { %1160 = vrot.lane.b32.xlu1 %v3032_v35, %s2709_s23 }
0x165a   :  { %v1155_v37 = vpop.permute.xlu0 %1154 }
0x165b   :  { %v1157_v39 = vmul.f32 %v2852_v15, %v1155_v37 }
0x165d   :  { %v1158_v40 = vadd.f32 %v2857_v17, %v1157_v39 }
0x16c2   :  { %v1161_v36 = vpop.permute.xlu1 %1160 }
0x16c3   :  { %2366 = vmatmul.mubr.msk.f32.vlgmr.msra.gmra.mxu1 %vm173_vm5, %v1161_v36 }
0x16c4   :  { %2380 = vmatpush3.msra.mxu1 %v2805_v4  ;;  %2387 = vmatprep.mubr.msk.f32.mxu1 %vm2706_vm0, %v2705_v1 }
0x16c5   :  { %2381 = vmatprep.subr.mxu1 %v2705_v1 }
0x16c6   :  { %2382 = vmatpush3.msra.mxu1 %v2808_v5 }
0x16c7   :  { %2383 = vmatprep.subr.mxu1 %v2705_v1 }
0x16c8   :  { %2384 = vmatpush3.msra.mxu1 %v2811_v6 }
0x16c9   :  { %2385 = vmatprep.subr.mxu1 %v2705_v1 }
0x16ca   :  { %2386 = vmatpush3.msra.mxu1 %v2816_v7 }
0x16cb   :  { %2401 = vmatprep.subr.mxu1 %v2705_v1 }
0x1783   :  { %v1230_v41 = vpop.f32.mrf.mxu1 }
0x1784   :  { %v1234_v43 = vadd.f32 %v1230_v41, %v1158_v40 }
0x1785   :  { %v2367_v44 = vpop.f32.mrf.mxu1 }
0x1786   :  { %v2167_v45 = vmul.f32 -1.442695, %v1234_v43 }
0x1788   :  { %2565 = vpow2.f32 %v2167_v45 }
0x1789   :  { %2567 = vtanh.f32 %v1234_v43 }
0x1795   :  { %v2566_v46 = vpop.eup %2565 }
0x1796   :  { %v1239_v47 = vadd.f32 1.0, %v2566_v46  ;;  %v2568_v48 = vpop.eup %2567 }
0x1798   :  { %2569 = vrcp.f32 %v1239_v47 }
0x17a5   :  { %v2570_v49 = vpop.eup %2569 }
0x17a6   :  { %v1242_v51 = vsel %vm2861_vm4, %v2568_v48, %v2570_v49 }
0x17a7   :  { %1245 = vrot.lane.b32.xlu1 %v1242_v51, %s2708_s2  ;;  %v1243_v55 = vmul.f32 %v1242_v51, %v1131_v32 }
0x1819   :  { %v1246_v52 = vpop.permute.xlu1 %1245 }
0x181a   :  { %v1248_v53 = vmul.f32 %v1246_v52, %v1242_v51 }
0x181c   :  { %1250 = vrot.lane.b32.xlu1 %v1248_v53, %s2709_s23 }
0x188e   :  { %v1251_v56 = vpop.permute.xlu1 %1250 }
0x188f   :  { %v1253_v57 = vadd.f32 %v1251_v56, %v1243_v55 }
0x1891   :  { %2571 = vtanh.f32 %v1253_v57 }
0x189e   :  { %v2572_v58 = vpop.eup %2571 }
0x189f   :  { %1256 = vrot.lane.b32.xlu0 %v2572_v58, %s2708_s2 }
0x18a3   :  { %1276 = vperm.xlu0 %2494, %v2846_v11  }
0x18a7   :  { %2495 = vset.pattern.permute.xlu0 %v2719_v23 }
0x1911   :  { %v1257_v59 = vpop.permute.xlu0 %1256 }
0x1912   :  { %v3055_v61 = vmul.f32 %v1257_v59, %v1242_v51  ;;  %v2720_v51 = vmov 11  }
0x1914   :  { %1282 = vrot.lane.b32.xlu1 %v3055_v61, %s2709_s23 }
0x191e   :  { %v1277_v63 = vpop.permute.xlu0 %1276 }
0x191f   :  { %v1279_v0 = vmul.f32 %v2852_v15, %v1277_v63 }
0x1921   :  { %v1280_v2 = vadd.f32 %v2857_v17, %v1279_v0 }
0x1986   :  { %v1283_v62 = vpop.permute.xlu1 %1282 }
0x1987   :  { %2377 = vmatmul.mubr.msk.f32.vlgmr.msra.gmra.mxu0 %vm173_vm5, %v1283_v62 }
0x1988   :  { %2391 = vmatpush3.msra.mxu0 %v2805_v4  ;;  %2398 = vmatprep.mubr.msk.f32.mxu0 %vm2706_vm0, %v2705_v1 }
0x1989   :  { %2392 = vmatprep.subr.mxu0 %v2705_v1 }
0x198a   :  { %2393 = vmatpush3.msra.mxu0 %v2808_v5 }
0x198b   :  { %2394 = vmatprep.subr.mxu0 %v2705_v1 }
0x198c   :  { %2395 = vmatpush3.msra.mxu0 %v2811_v6 }
0x198d   :  { %2396 = vmatprep.subr.mxu0 %v2705_v1 }
0x198e   :  { %2397 = vmatpush3.msra.mxu0 %v2816_v7 }
0x198f   :  { %2412 = vmatprep.subr.mxu0 %v2705_v1 }
0x1a47   :  { %v1352_v8 = vpop.f32.mrf.mxu0 }
0x1a48   :  { %v1356_v9 = vadd.f32 %v1352_v8, %v1280_v2 }
0x1a49   :  { %v2378_v10 = vpop.f32.mrf.mxu0 }
0x1a4a   :  { %v2169_v12 = vmul.f32 -1.442695, %v1356_v9 }
0x1a4c   :  { %2573 = vpow2.f32 %v2169_v12 }
0x1a4d   :  { %2575 = vtanh.f32 %v1356_v9 }
0x1a59   :  { %v2574_v13 = vpop.eup %2573 }
0x1a5a   :  { %v1361_v14 = vadd.f32 1.0, %v2574_v13  ;;  %v2576_v18 = vpop.eup %2575  ;;  %v2721_v13 = vmov 12  }
0x1a5c   :  { %2577 = vrcp.f32 %v1361_v14 }
0x1a69   :  { %v2578_v19 = vpop.eup %2577 }
0x1a6a   :  { %v1364_v20 = vsel %vm2861_vm4, %v2576_v18, %v2578_v19 }
0x1a6b   :  { %1367 = vrot.lane.b32.xlu1 %v1364_v20, %s2708_s2  ;;  %v1365_v24 = vmul.f32 %v1364_v20, %v1253_v57 }
0x1add   :  { %v1368_v21 = vpop.permute.xlu1 %1367 }
0x1ade   :  { %v1370_v22 = vmul.f32 %v1368_v21, %v1364_v20 }
0x1ae0   :  { %1372 = vrot.lane.b32.xlu1 %v1370_v22, %s2709_s23 }
0x1b52   :  { %v1373_v25 = vpop.permute.xlu1 %1372 }
0x1b53   :  { %v1375_v28 = vadd.f32 %v1373_v25, %v1365_v24  ;;  %v2629_v24 = vld [vmem:[#allocation6 + $0x18] sm:$0xff]  ;;  %v2630_v25 = vld [vmem:[#allocation6 + $0x10] sm:$0xff] }
0x1b55   :  { %2579 = vtanh.f32 %v1375_v28 }
0x1b62   :  { %v2580_v29 = vpop.eup %2579 }
0x1b63   :  { %1378 = vrot.lane.b32.xlu0 %v2580_v29, %s2708_s2  ;;  %v2632_v29 = vld [vmem:[#allocation6] sm:$0xff] }
0x1b67   :  { %1398 = vperm.xlu0 %2495, %v2846_v11  }
0x1b6b   :  { %2496 = vset.pattern.permute.xlu0 %v2720_v51 }
0x1bd5   :  { %v1379_v30 = vpop.permute.xlu0 %1378 }
0x1bd6   :  { %v3078_v31 = vmul.f32 %v1379_v30, %v1364_v20 }
0x1bd8   :  { %1404 = vrot.lane.b32.xlu1 %v3078_v31, %s2709_s23 }
0x1be2   :  { %v1399_v33 = vpop.permute.xlu0 %1398 }
0x1be3   :  { %v1401_v34 = vmul.f32 %v2852_v15, %v1399_v33 }
0x1be5   :  { %v1402_v36 = vadd.f32 %v2857_v17, %v1401_v34 }
0x1c4a   :  { %v1405_v32 = vpop.permute.xlu1 %1404 }
0x1c4b   :  { %2388 = vmatmul.mubr.msk.f32.vlgmr.msra.gmra.mxu1 %vm173_vm5, %v1405_v32  ;;  %v3137_v32 = vld [vmem:[%s3298_s3] ss:$0 sm:$0xff] }
0x1c4c   :  { %2402 = vmatpush3.msra.mxu1 %v2805_v4  ;;  %2409 = vmatprep.mubr.msk.f32.mxu1 %vm2706_vm0, %v2705_v1 }
0x1c4d   :  { %2403 = vmatprep.subr.mxu1 %v2705_v1 }
0x1c4e   :  { %2404 = vmatpush3.msra.mxu1 %v2808_v5 }
0x1c4f   :  { %2405 = vmatprep.subr.mxu1 %v2705_v1 }
0x1c50   :  { %2406 = vmatpush3.msra.mxu1 %v2811_v6 }
0x1c51   :  { %2407 = vmatprep.subr.mxu1 %v2705_v1 }
0x1c52   :  { %2408 = vmatpush3.msra.mxu1 %v2816_v7 }
0x1c53   :  { %2423 = vmatprep.subr.mxu1 %v2705_v1 }
0x1d0b   :  { %v1474_v37 = vpop.f32.mrf.mxu1 }
0x1d0c   :  { %v1478_v39 = vadd.f32 %v1474_v37, %v1402_v36 }
0x1d0d   :  { %v2389_v40 = vpop.f32.mrf.mxu1 }
0x1d0e   :  { %v2171_v41 = vmul.f32 -1.442695, %v1478_v39 }
0x1d10   :  { %2581 = vpow2.f32 %v2171_v41 }
0x1d11   :  { %2583 = vtanh.f32 %v1478_v39 }
0x1d1d   :  { %v2582_v43 = vpop.eup %2581 }
0x1d1e   :  { %v1483_v44 = vadd.f32 1.0, %v2582_v43  ;;  %v2584_v45 = vpop.eup %2583 }
0x1d20   :  { %2585 = vrcp.f32 %v1483_v44 }
0x1d2d   :  { %v2586_v46 = vpop.eup %2585 }
0x1d2e   :  { %v1486_v47 = vsel %vm2861_vm4, %v2584_v45, %v2586_v46 }
0x1d2f   :  { %1489 = vrot.lane.b32.xlu1 %v1486_v47, %s2708_s2  ;;  %v1487_v52 = vmul.f32 %v1486_v47, %v1375_v28  ;;  %v2631_v28 = vld [vmem:[#allocation6 + $0x8] sm:$0xff] }
0x1da1   :  { %v1490_v48 = vpop.permute.xlu1 %1489 }
0x1da2   :  { %v1492_v49 = vmul.f32 %v1490_v48, %v1486_v47 }
0x1da4   :  { %1494 = vrot.lane.b32.xlu1 %v1492_v49, %s2709_s23 }
0x1e16   :  { %v1495_v53 = vpop.permute.xlu1 %1494 }
0x1e17   :  { %v1497_v54 = vadd.f32 %v1495_v53, %v1487_v52 }
0x1e19   :  { %2587 = vtanh.f32 %v1497_v54 }
0x1e26   :  { %v2588_v55 = vpop.eup %2587 }
0x1e27   :  { %1500 = vrot.lane.b32.xlu0 %v2588_v55, %s2708_s2 }
0x1e2b   :  { %1520 = vperm.xlu0 %2496, %v2846_v11  }
0x1e2f   :  { %2497 = vset.pattern.permute.xlu0 %v2721_v13 }
0x1e99   :  { %v1501_v56 = vpop.permute.xlu0 %1500 }
0x1e9a   :  { %v3101_v57 = vmul.f32 %v1501_v56, %v1486_v47 }
0x1e9c   :  { %1526 = vrot.lane.b32.xlu1 %v3101_v57, %s2709_s23 }
0x1ea6   :  { %v1521_v59 = vpop.permute.xlu0 %1520 }
0x1f0e   :  { %v1527_v58 = vpop.permute.xlu1 %1526 }
0x1f0f   :  { %2399 = vmatmul.mubr.msk.f32.vlgmr.msra.gmra.mxu0 %vm173_vm5, %v1527_v58 }
0x1f10   :  { %2413 = vmatpush3.msra.mxu0 %v2805_v4  ;;  %2420 = vmatprep.mubr.msk.f32.mxu0 %vm2706_vm0, %v2705_v1  ;;  %v1523_v4 = vmul.f32 %v2852_v15, %v1521_v59 }
0x1f11   :  { %2414 = vmatprep.subr.mxu0 %v2705_v1 }
0x1f12   :  { %2415 = vmatpush3.msra.mxu0 %v2808_v5  ;;  %v1524_v62 = vadd.f32 %v2857_v17, %v1523_v4  ;;  %v3161_v4 = vld [vmem:[%s3300_s5] ss:$0 sm:$0xff] }
0x1f13   :  { %2416 = vmatprep.subr.mxu0 %v2705_v1 }
0x1f14   :  { %2417 = vmatpush3.msra.mxu0 %v2811_v6 }
0x1f15   :  { %2418 = vmatprep.subr.mxu0 %v2705_v1 }
0x1f16   :  { %2419 = vmatpush3.msra.mxu0 %v2816_v7 }
0x1f17   :  { %2434 = vmatprep.subr.mxu0 %v2705_v1 }
0x1fcf   :  { %v1596_v63 = vpop.f32.mrf.mxu0 }
0x1fd0   :  { %v1600_v0 = vadd.f32 %v1596_v63, %v1524_v62 }
0x1fd1   :  { %v2400_v2 = vpop.f32.mrf.mxu0 }
0x1fd2   :  { %v2173_v8 = vmul.f32 -1.442695, %v1600_v0 }
0x1fd4   :  { %2589 = vpow2.f32 %v2173_v8 }
0x1fd5   :  { %2591 = vtanh.f32 %v1600_v0 }
0x1fe1   :  { %v2590_v5 = vpop.eup %2589 }
0x1fe2   :  { %v1605_v9 = vadd.f32 1.0, %v2590_v5  ;;  %v2592_v6 = vpop.eup %2591 }
0x1fe4   :  { %2593 = vrcp.f32 %v1605_v9 }
0x1ff1   :  { %v2594_v10 = vpop.eup %2593 }
0x1ff2   :  { %v1608_v7 = vsel %vm2861_vm4, %v2592_v6, %v2594_v10 }
0x1ff3   :  { %1611 = vrot.lane.b32.xlu1 %v1608_v7, %s2708_s2  ;;  %v1609_v14 = vmul.f32 %v1608_v7, %v1497_v54 }
0x2065   :  { %v1612_v12 = vpop.permute.xlu1 %1611 }
0x2066   :  { %v1614_v15 = vmul.f32 %v1612_v12, %v1608_v7 }
0x2068   :  { %1616 = vrot.lane.b32.xlu1 %v1614_v15, %s2709_s23  ;;  %v2723_v15 = vmov 14  }
0x20da   :  { %v1617_v18 = vpop.permute.xlu1 %1616 }
0x20db   :  { %v1619_v19 = vadd.f32 %v1617_v18, %v1609_v14 }
0x20dd   :  { %2595 = vtanh.f32 %v1619_v19 }
0x20ea   :  { %v2596_v20 = vpop.eup %2595 }
0x20eb   :  { %1622 = vrot.lane.b32.xlu0 %v2596_v20, %s2708_s2 }
0x20ef   :  { %1642 = vperm.xlu0 %2497, %v2846_v11  }
0x215d   :  { %v1623_v21 = vpop.permute.xlu0 %1622 }
0x215e   :  { %v3124_v22 = vmul.f32 %v1623_v21, %v1608_v7 }
0x2160   :  { %1648 = vrot.lane.b32.xlu1 %v3124_v22, %s2709_s23 }
0x216a   :  { %v1643_v30 = vpop.permute.xlu0 %1642 }
0x216b   :  { %v1645_v33 = vmul.f32 %v3137_v32, %v1643_v30 }
0x216d   :  { %v1646_v34 = vadd.f32 %v2857_v17, %v1645_v33  ;;  %v2722_v17 = vmov 13  }
0x216e   :  { %2498 = vset.pattern.permute.xlu0 %v2722_v17 }
0x21d2   :  { %v1649_v23 = vpop.permute.xlu1 %1648 }
0x21d3   :  { %2410 = vmatmul.mubr.msk.f32.vlgmr.msra.gmra.mxu1 %vm173_vm5, %v1649_v23 }
0x21d4   :  { %2424 = vmatpush3.msra.mxu1 %v2629_v24  ;;  %2431 = vmatprep.mubr.msk.f32.mxu1 %vm2706_vm0, %v2705_v1 }
0x21d5   :  { %2425 = vmatprep.subr.mxu1 %v2705_v1 }
0x21d6   :  { %2426 = vmatpush3.msra.mxu1 %v2630_v25 }
0x21d7   :  { %2427 = vmatprep.subr.mxu1 %v2705_v1 }
0x21d8   :  { %2428 = vmatpush3.msra.mxu1 %v2631_v28 }
0x21d9   :  { %2429 = vmatprep.subr.mxu1 %v2705_v1 }
0x21da   :  { %2430 = vmatpush3.msra.mxu1 %v2632_v29 }
0x2293   :  { %v1718_v36 = vpop.f32.mrf.mxu1 }
0x2294   :  { %v1722_v37 = vadd.f32 %v1718_v36, %v1646_v34 }
0x2295   :  { %v2411_v39 = vpop.f32.mrf.mxu1 }
0x2296   :  { %v2175_v40 = vmul.f32 -1.442695, %v1722_v37 }
0x2298   :  { %2597 = vpow2.f32 %v2175_v40 }
0x2299   :  { %2599 = vtanh.f32 %v1722_v37 }
0x22a5   :  { %v2598_v41 = vpop.eup %2597 }
0x22a6   :  { %v1727_v43 = vadd.f32 1.0, %v2598_v41  ;;  %v2600_v44 = vpop.eup %2599 }
0x22a8   :  { %2601 = vrcp.f32 %v1727_v43 }
0x22b5   :  { %v2602_v45 = vpop.eup %2601 }
0x22b6   :  { %v1730_v46 = vsel %vm2861_vm4, %v2600_v44, %v2602_v45  ;;  %v2724_v45 = vmov 15  }
0x22b7   :  { %1733 = vrot.lane.b32.xlu1 %v1730_v46, %s2708_s2  ;;  %v1731_v49 = vmul.f32 %v1730_v46, %v1619_v19 }
0x2329   :  { %v1734_v47 = vpop.permute.xlu1 %1733 }
0x232a   :  { %v1736_v48 = vmul.f32 %v1734_v47, %v1730_v46 }
0x232c   :  { %1738 = vrot.lane.b32.xlu1 %v1736_v48, %s2709_s23 }
0x239e   :  { %v1739_v51 = vpop.permute.xlu1 %1738 }
0x239f   :  { %v1741_v52 = vadd.f32 %v1739_v51, %v1731_v49 }
0x23a1   :  { %2603 = vtanh.f32 %v1741_v52 }
0x23ae   :  { %v2604_v53 = vpop.eup %2603 }
0x23af   :  { %1744 = vrot.lane.b32.xlu0 %v2604_v53, %s2708_s2 }
0x23b3   :  { %1764 = vperm.xlu0 %2498, %v2846_v11  }
0x23b7   :  { %2499 = vset.pattern.permute.xlu0 %v2723_v15 }
0x2421   :  { %v1745_v54 = vpop.permute.xlu0 %1744 }
0x2422   :  { %v3147_v55 = vmul.f32 %v1745_v54, %v1730_v46 }
0x2424   :  { %1770 = vrot.lane.b32.xlu1 %v3147_v55, %s2709_s23 }
0x242e   :  { %v1765_v58 = vpop.permute.xlu0 %1764 }
0x242f   :  { %v1767_v59 = vmul.f32 %v3137_v32, %v1765_v58 }
0x2431   :  { %v1768_v62 = vadd.f32 %v3161_v4, %v1767_v59 }
0x2496   :  { %v1771_v56 = vpop.permute.xlu1 %1770 }
0x2497   :  { %2421 = vmatmul.mubr.msk.f32.vlgmr.msra.gmra.mxu0 %vm173_vm5, %v1771_v56 }
0x2498   :  { %2435 = vmatpush3.msra.mxu0 %v2629_v24  ;;  %2442 = vmatprep.mubr.msk.f32.mxu0 %vm2706_vm0, %v2705_v1  ;;  %vm1395_vm0 = vcmask 74824  }
0x2499   :  { %2436 = vmatprep.subr.mxu0 %v2705_v1 }
0x249a   :  { %2437 = vmatpush3.msra.mxu0 %v2630_v25 }
0x249b   :  { %2438 = vmatprep.subr.mxu0 %v2705_v1 }
0x249c   :  { %2439 = vmatpush3.msra.mxu0 %v2631_v28 }
0x249d   :  { %2440 = vmatprep.subr.mxu0 %v2705_v1 }
0x249e   :  { %2441 = vmatpush3.msra.mxu0 %v2632_v29 }
0x2557   :  { %v1840_v63 = vpop.f32.mrf.mxu0 }
0x2558   :  { %v1844_v0 = vadd.f32 %v1840_v63, %v1768_v62 }
0x2559   :  { %v2422_v2 = vpop.f32.mrf.mxu0 }
0x255a   :  { %v2177_v8 = vmul.f32 -1.442695, %v1844_v0 }
0x255c   :  { %2605 = vpow2.f32 %v2177_v8 }
0x255d   :  { %2607 = vtanh.f32 %v1844_v0 }
0x2569   :  { %v2606_v5 = vpop.eup %2605 }
0x256a   :  { %v1849_v9 = vadd.f32 1.0, %v2606_v5  ;;  %v2608_v1 = vpop.eup %2607 }
0x256c   :  { %2609 = vrcp.f32 %v1849_v9 }
0x2579   :  { %v2610_v6 = vpop.eup %2609 }
0x257a   :  { %v1852_v10 = vsel %vm2861_vm4, %v2608_v1, %v2610_v6 }
0x257b   :  { %1855 = vrot.lane.b32.xlu1 %v1852_v10, %s2708_s2  ;;  %v1853_v13 = vmul.f32 %v1852_v10, %v1741_v52  ;;  %v2150_v52 = vld [vmem:[%s3301_s6] ss:$0 sm:$0xff]  ;;  %s2726_s6 = smov 1  }
0x25ed   :  { %v1856_v7 = vpop.permute.xlu1 %1855 }
0x25ee   :  { %v1858_v12 = vmul.f32 %v1856_v7, %v1852_v10 }
0x25f0   :  { %1860 = vrot.lane.b32.xlu1 %v1858_v12, %s2709_s23 }
0x2662   :  { %v1861_v14 = vpop.permute.xlu1 %1860 }
0x2663   :  { %v1863_v18 = vadd.f32 %v1861_v14, %v1853_v13 }
0x2665   :  { %2611 = vtanh.f32 %v1863_v18 }
0x2672   :  { %v2612_v19 = vpop.eup %2611 }
0x2673   :  { %1866 = vrot.lane.b32.xlu0 %v2612_v19, %s2708_s2 }
0x2677   :  { %1886 = vperm.xlu0 %2499, %v2846_v11  }
0x267b   :  { %2500 = vset.pattern.permute.xlu0 %v2724_v45 }
0x26e5   :  { %v1867_v20 = vpop.permute.xlu0 %1866 }
0x26e6   :  { %v3170_v21 = vmul.f32 %v1867_v20, %v1852_v10 }
0x26e8   :  { %1892 = vrot.lane.b32.xlu1 %v3170_v21, %s2709_s23 }
0x26f2   :  { %v1887_v24 = vpop.permute.xlu0 %1886 }
0x26f3   :  { %v1889_v25 = vmul.f32 %v3137_v32, %v1887_v24 }
0x26f5   :  { %v1890_v28 = vadd.f32 %v3161_v4, %v1889_v25 }
0x275a   :  { %v1893_v23 = vpop.permute.xlu1 %1892 }
0x275b   :  { %2432 = vmatmul.mubr.msk.f32.vlgmr.msra.gmra.mxu1 %vm173_vm5, %v1893_v23 }
0x281b   :  { %v1962_v29 = vpop.f32.mrf.mxu1 }
0x281c   :  { %v1966_v30 = vadd.f32 %v1962_v29, %v1890_v28 }
0x281d   :  { %v2433_v33 = vpop.f32.mrf.mxu1 }
0x281e   :  { %v2179_v34 = vmul.f32 -1.442695, %v1966_v30 }
0x2820   :  { %2613 = vpow2.f32 %v2179_v34 }
0x2821   :  { %2615 = vtanh.f32 %v1966_v30 }
0x282d   :  { %v2614_v36 = vpop.eup %2613 }
0x282e   :  { %v1971_v37 = vadd.f32 1.0, %v2614_v36  ;;  %v2616_v39 = vpop.eup %2615 }
0x2830   :  { %2617 = vrcp.f32 %v1971_v37 }
0x283d   :  { %v2618_v40 = vpop.eup %2617 }
0x283e   :  { %v1974_v41 = vsel %vm2861_vm4, %v2616_v39, %v2618_v40 }
0x283f   :  { %1977 = vrot.lane.b32.xlu1 %v1974_v41, %s2708_s2  ;;  %v1975_v46 = vmul.f32 %v1974_v41, %v1863_v18 }
0x28b1   :  { %v1978_v43 = vpop.permute.xlu1 %1977 }
0x28b2   :  { %v1980_v44 = vmul.f32 %v1978_v43, %v1974_v41 }
0x28b4   :  { %1982 = vrot.lane.b32.xlu1 %v1980_v44, %s2709_s23 }
0x2926   :  { %v1983_v47 = vpop.permute.xlu1 %1982 }
0x2927   :  { %v3181_v48 = vadd.f32 %v1983_v47, %v1975_v46 }
0x2929   :  { %2619 = vtanh.f32 %v3181_v48 }
0x2936   :  { %v2620_v17 = vpop.eup %2619 }
0x2937   :  { %1988 = vrot.lane.b32.xlu0 %v2620_v17, %s2708_s2 }
0x293b   :  { %2008 = vperm.xlu0 %2500, %v2846_v11  }
0x29a9   :  { %v1989_v49 = vpop.permute.xlu0 %1988 }
0x29aa   :  { %v3186_v51 = vmul.f32 %v1989_v49, %v1974_v41 }
0x29ac   :  { %2014 = vrot.lane.b32.xlu1 %v3186_v51, %s2709_s23 }
0x29b0   :  { %278 = vrot.lane.b32.xlu1 %v2150_v52, %s2725_s28 }
0x29b6   :  { %v2009_v8 = vpop.permute.xlu0 %2008 }
0x29b7   :  { %v2011_v10 = vmul.f32 %v3137_v32, %v2009_v8 }
0x2a1e   :  { %v2015_v53 = vpop.permute.xlu1 %2014 }
0x2a1f   :  { %2443 = vmatmul.mubr.msk.f32.vlgmr.msra.gmra.mxu0 %vm173_vm5, %v2015_v53  ;;  %vm2005_vm5 = vcmask 115824  }
0x2a22   :  { %v3194_v54 = vpop.permute.xlu1 %278 }
0x2a23   :  { %v281_v11 = vmul.f32 %v3194_v54, %v2871_v38  ;;  %v406_v56 = vmul.f32 %v2894_v60, %v3194_v54  ;;  %v528_v0 = vmul.f32 %v2917_v27, %v3194_v54  ;;  %v3207_v60 = vld [vmem:[#allocation2] ss:$0 sm:$0xff]  ;;  %v2012_v27 = vadd.f32 %v3161_v4, %v2011_v10 }
0x2a24   :  { %v772_v32 = vmul.f32 %v2963_v16, %v3194_v54  ;;  %v650_v26 = vmul.f32 %v2940_v50, %v3194_v54  ;;  %v1016_v33 = vmul.f32 %v3009_v3, %v3194_v54  ;;  %v894_v45 = vmul.f32 %v2986_v42, %v3194_v54 }
0x2a25   :  { %283 = vrot.lane.b32.xlu1 %v281_v11, %s2709_s23  ;;  %v1992_v10 = vmul.f32 %v3186_v51, %v3194_v54  ;;  %v1382_v51 = vmul.f32 %v3078_v31, %v3194_v54 }
0x2a29   :  { %408 = vrot.lane.b32.xlu1 %v406_v56, %s2709_s23  ;;  %v1138_v56 = vmul.f32 %v3032_v35, %v3194_v54 }
0x2a97   :  { %v284_v58 = vpop.permute.xlu1 %283 }
0x2a98   :  { %v287_v59 = vsel %vm286_vm6, %v284_v58, 0.0 }
0x2a99   :  { %288 = vadd.xlane.f32.xlu0 %v287_v59 }
0x2a9b   :  { %v409_v62 = vpop.permute.xlu1 %408 }
0x2a9c   :  { %v411_v63 = vsel %vm286_vm6, %v409_v62, 0.0 }
0x2a9d   :  { %412 = vadd.xlane.f32.xlu1 %v411_v63 }
0x2aae   :  { %530 = vrot.lane.b32.xlu1 %v528_v0, %s2709_s23  ;;  %v1260_v0 = vmul.f32 %v3055_v61, %v3194_v54  ;;  %v1504_v61 = vmul.f32 %v3101_v57, %v3194_v54 }
0x2adf   :  { %v2084_v38 = vpop.f32.mrf.mxu0 }
0x2ae0   :  { %v2088_v7 = vadd.f32 %v2084_v38, %v2012_v27 }
0x2ae1   :  { %v2444_v2 = vpop.f32.mrf.mxu0 }
0x2ae2   :  { %v2181_v12 = vmul.f32 -1.442695, %v2088_v7 }
0x2ae4   :  { %2621 = vpow2.f32 %v2181_v12 }
0x2af1   :  { %v2622_v13 = vpop.eup %2621 }
0x2af2   :  { %v2093_v18 = vadd.f32 1.0, %v2622_v13 }
0x2af4   :  { %2623 = vrcp.f32 %v2093_v18  ;;  %v1870_v18 = vmul.f32 %v3170_v21, %v3194_v54 }
0x2af5   :  { %2625 = vtanh.f32 %v2088_v7 }
0x2b01   :  { %v2624_v19 = vpop.eup %2623 }
0x2b02   :  { %v2626_v20 = vpop.eup %2625 }
0x2b03   :  { %v3216_v23 = vsel %vm2861_vm4, %v2626_v20, %v2624_v19  ;;  %vm1883_vm4 = vcmask 107624  }
0x2b04   :  { %v2097_v35 = vmul.f32 %v3216_v23, %v3181_v48  ;;  %v1626_v48 = vmul.f32 %v3124_v22, %v3194_v54 }
0x2b22   :  { %v289_v5 = vpop.xlane.xlu0 %288 }
0x2b23   :  { %v296_v9 = vadd.f32 %v3207_v60, %v289_v5 }
0x2b25   :  { %298 = vst.msk [vmem:[#allocation8] sm:$0x3] %vm297_vm7, %v296_v9 }
0x2b26   :  { %v413_v1 = vpop.xlane.xlu1 %412 }
0x2b27   :  { %v414_v6 = vadd.f32 %v3207_v60, %v413_v1 }
0x2b29   :  { %416 = vrot.lane.b32.xlu0 %v414_v6, %s2726_s6  ;;  %v1748_v6 = vmul.f32 %v3147_v55, %v3194_v54 }
0x2b2a   :  { %v531_v15 = vpop.permute.xlu1 %530 }
0x2b2b   :  { %v533_v14 = vsel %vm286_vm6, %v531_v15, 0.0 }
0x2b48   :  { %534 = vadd.xlane.f32.xlu0 %v533_v14 }
0x2b5e   :  { %2099 = vrot.lane.b32.xlu0 %v3216_v23, %s2708_s2 }
0x2b62   :  { %774 = vrot.lane.b32.xlu0 %v772_v32, %s2709_s23 }
0x2b9b   :  { %v417_v4 = vpop.permute.xlu0 %416 }
0x2b9c   :  { %420 = vst.msk [vmem:[#allocation8] sm:$0x3] %vm419_vm8, %v417_v4 }
0x2bd1   :  { %v535_v24 = vpop.xlane.xlu0 %534 }
0x2bd2   :  { %v536_v25 = vadd.f32 %v3207_v60, %v535_v24 }
0x2bd4   :  { %538 = vrot.lane.b32.xlu1 %v536_v25, %s2727_s29 }
0x2bd5   :  { %v2100_v28 = vpop.permute.xlu0 %2099 }
0x2bd6   :  { %v2102_v16 = vmul.f32 %v2100_v28, %v3216_v23 }
0x2bd8   :  { %652 = vrot.lane.b32.xlu1 %v650_v26, %s2709_s23 }
0x2bd9   :  { %v775_v29 = vpop.permute.xlu0 %774 }
0x2bda   :  { %v777_v30 = vsel %vm286_vm6, %v775_v29, 0.0 }
0x2bdb   :  { %778 = vadd.xlane.f32.xlu0 %v777_v30 }
0x2bf1   :  { %2104 = vrot.lane.b32.xlu0 %v2102_v16, %s2709_s23 }
0x2bf5   :  { %1018 = vrot.lane.b32.xlu0 %v1016_v33, %s2709_s23 }
0x2c46   :  { %v539_v34 = vpop.permute.xlu1 %538 }
0x2c47   :  { %542 = vst.msk [vmem:[#allocation8] sm:$0x3] %vm541_vm9, %v539_v34 }
0x2c4a   :  { %v653_v36 = vpop.permute.xlu1 %652 }
0x2c4b   :  { %v655_v50 = vsel %vm286_vm6, %v653_v36, 0.0 }
0x2c4c   :  { %656 = vadd.xlane.f32.xlu1 %v655_v50 }
0x2c64   :  { %v779_v37 = vpop.xlane.xlu0 %778 }
0x2c65   :  { %v780_v3 = vadd.f32 %v3207_v60, %v779_v37 }
0x2c68   :  { %v2105_v39 = vpop.permute.xlu0 %2104 }
0x2c69   :  { %v2107_v38 = vadd.f32 %v2105_v39, %v2097_v35 }
0x2c6b   :  { %2627 = vtanh.f32 %v2107_v38 }
0x2c6c   :  { %v1019_v40 = vpop.permute.xlu0 %1018 }
0x2c6d   :  { %v1021_v41 = vsel %vm286_vm6, %v1019_v40, 0.0 }
0x2c6e   :  { %1022 = vadd.xlane.f32.xlu0 %v1021_v41 }
0x2c78   :  { %v2628_v5 = vpop.eup %2627 }
0x2cd5   :  { %v657_v43 = vpop.xlane.xlu1 %656 }
0x2cd6   :  { %v658_v44 = vadd.f32 %v3207_v60, %v657_v43 }
0x2cd8   :  { %660 = vrot.lane.b32.xlu1 %v658_v44, %s2728_s30 }
0x2cdc   :  { %782 = vrot.lane.b32.xlu1 %v780_v3, %s2729_s9 }
0x2ce0   :  { %896 = vrot.lane.b32.xlu1 %v894_v45, %s2709_s23 }
0x2cf7   :  { %v1023_v11 = vpop.xlane.xlu0 %1022 }
0x2cf8   :  { %v1024_v42 = vadd.f32 %v3207_v60, %v1023_v11 }
0x2d4a   :  { %v661_v46 = vpop.permute.xlu1 %660 }
0x2d4b   :  { %664 = vst.msk [vmem:[#allocation8] sm:$0x3] %vm663_vm10, %v661_v46 }
0x2d4e   :  { %v783_v47 = vpop.permute.xlu1 %782 }
0x2d4f   :  { %786 = vst.msk [vmem:[#allocation8] sm:$0x3] %vm785_vm11, %v783_v47 }
0x2d52   :  { %v897_v17 = vpop.permute.xlu1 %896 }
0x2d53   :  { %v899_v49 = vsel %vm286_vm6, %v897_v17, 0.0 }
0x2d54   :  { %900 = vadd.xlane.f32.xlu1 %v899_v49 }
0x2ddd   :  { %v901_v52 = vpop.xlane.xlu1 %900 }
0x2dde   :  { %v902_v53 = vadd.f32 %v3207_v60, %v901_v52 }
0x2de0   :  { %904 = vrot.lane.b32.xlu1 %v902_v53, %s2730_s10 }
0x2de4   :  { %1026 = vrot.lane.b32.xlu1 %v1024_v42, %s2731_s11 }
0x2de8   :  { %1140 = vrot.lane.b32.xlu1 %v1138_v56, %s2709_s23 }
0x2e52   :  { %v905_v58 = vpop.permute.xlu1 %904 }
0x2e53   :  { %908 = vst.msk [vmem:[#allocation8] sm:$0x3] %vm907_vm12, %v905_v58 }
0x2e56   :  { %v1027_v59 = vpop.permute.xlu1 %1026 }
0x2e57   :  { %1030 = vst.msk [vmem:[#allocation8] sm:$0x3] %vm1029_vm13, %v1027_v59 }
0x2e5a   :  { %v1141_v62 = vpop.permute.xlu1 %1140 }
0x2e5b   :  { %v1143_v63 = vsel %vm286_vm6, %v1141_v62, 0.0 }
0x2e5c   :  { %1144 = vadd.xlane.f32.xlu1 %v1143_v63 }
0x2e6d   :  { %1262 = vrot.lane.b32.xlu1 %v1260_v0, %s2709_s23 }
0x2ee5   :  { %v1145_v2 = vpop.xlane.xlu1 %1144 }
0x2ee6   :  { %v1146_v8 = vadd.f32 %v3207_v60, %v1145_v2 }
0x2ee8   :  { %1148 = vrot.lane.b32.xlu0 %v1146_v8, %s2732_s12 }
0x2ee9   :  { %v1263_v9 = vpop.permute.xlu1 %1262 }
0x2eea   :  { %v1265_v1 = vsel %vm286_vm6, %v1263_v9, 0.0 }
0x2eec   :  { %2110 = vrot.lane.b32.xlu0 %v2628_v5, %s2708_s2 }
0x2f0b   :  { %1266 = vadd.xlane.f32.xlu0 %v1265_v1 }
0x2f21   :  { %1506 = vrot.lane.b32.xlu0 %v1504_v61, %s2709_s23 }
0x2f25   :  { %1628 = vrot.lane.b32.xlu0 %v1626_v48, %s2709_s23 }
0x2f29   :  { %1750 = vrot.lane.b32.xlu0 %v1748_v6, %s2709_s23 }
0x2f2d   :  { %1994 = vrot.lane.b32.xlu0 %v1992_v10, %s2709_s23 }
0x2f5a   :  { %v1149_v27 = vpop.permute.xlu0 %1148 }
0x2f5b   :  { %1152 = vst.msk [vmem:[#allocation8] sm:$0x3] %vm1151_vm14, %v1149_v27 }
0x2f5e   :  { %v2111_v57 = vpop.permute.xlu0 %2110 }
0x2f5f   :  { %v2113_v7 = vmul.f32 %v2111_v57, %v3216_v23 }
0x2f61   :  { %v2114_v22 = vmul.f32 %v2113_v7, %v3194_v54 }
0x2f63   :  { %2116 = vrot.lane.b32.xlu0 %v2114_v22, %s2709_s23 }
0x2f94   :  { %v1267_v12 = vpop.xlane.xlu0 %1266 }
0x2f95   :  { %v1268_v55 = vadd.f32 %v3207_v60, %v1267_v12 }
0x2f97   :  { %1270 = vrot.lane.b32.xlu1 %v1268_v55, %s2704_s15  ;;  %s2736_s15 = smov 15  }
0x2f98   :  { %v1507_v31 = vpop.permute.xlu0 %1506 }
0x2f99   :  { %v1509_v32 = vsel %vm286_vm6, %v1507_v31, 0.0 }
0x2f9b   :  { %1384 = vrot.lane.b32.xlu1 %v1382_v51, %s2709_s23 }
0x2f9c   :  { %v1629_v23 = vpop.permute.xlu0 %1628 }
0x2f9d   :  { %v1631_v41 = vsel %vm286_vm6, %v1629_v23, 0.0 }
0x2fa0   :  { %v1751_v4 = vpop.permute.xlu0 %1750 }
0x2fa1   :  { %v1753_v24 = vsel %vm286_vm6, %v1751_v4, 0.0 }
0x2fa4   :  { %v1995_v21 = vpop.permute.xlu0 %1994 }
0x2fa5   :  { %v1997_v54 = vsel %vm286_vm6, %v1995_v21, 0.0 }
0x2fd5   :  { %v2117_v26 = vpop.permute.xlu0 %2116 }
0x2fd6   :  { %v2119_v29 = vsel %vm286_vm6, %v2117_v26, 0.0 }
0x3009   :  { %v1271_v15 = vpop.permute.xlu1 %1270 }
0x300a   :  { %1274 = vst.msk [vmem:[#allocation8] sm:$0x3] %vm1273_vm15, %v1271_v15 }
0x300d   :  { %v1385_v13 = vpop.permute.xlu1 %1384 }
0x300e   :  { %v1387_v14 = vsel %vm286_vm6, %v1385_v13, 0.0 }
0x300f   :  { %1388 = vadd.xlane.f32.xlu1 %v1387_v14 }
0x3020   :  { %1872 = vrot.lane.b32.xlu1 %v1870_v18, %s2709_s23 }
0x3098   :  { %v1389_v19 = vpop.xlane.xlu1 %1388 }
0x3099   :  { %v1390_v20 = vadd.f32 %v3207_v60, %v1389_v19 }
0x309b   :  { %1392 = vrot.lane.b32.xlu0 %v1390_v20, %s2733_s13 }
0x309c   :  { %v1873_v25 = vpop.permute.xlu1 %1872 }
0x309d   :  { %v1875_v28 = vsel %vm286_vm6, %v1873_v25, 0.0  ;;  %vm2127_vm6 = vcmask 124024  }
0x30ba   :  { %1510 = vadd.xlane.f32.xlu0 %v1509_v32 }
0x30be   :  { %1754 = vadd.xlane.f32.xlu0 %v1753_v24 }
0x30c2   :  { %1876 = vadd.xlane.f32.xlu0 %v1875_v28 }
0x30c6   :  { %1998 = vadd.xlane.f32.xlu0 %v1997_v54 }
0x30ca   :  { %2120 = vadd.xlane.f32.xlu0 %v2119_v29 }
0x310d   :  { %v1393_v30 = vpop.permute.xlu0 %1392 }
0x310e   :  { %1396 = vst.msk [vmem:[#allocation8] sm:$0x3] %vm1395_vm0, %v1393_v30 }
0x3143   :  { %v1511_v16 = vpop.xlane.xlu0 %1510 }
0x3144   :  { %v1512_v33 = vadd.f32 %v3207_v60, %v1511_v16 }
0x3146   :  { %1514 = vrot.lane.b32.xlu1 %v1512_v33, %s2734_s7 }
0x3147   :  { %v1755_v34 = vpop.xlane.xlu0 %1754 }
0x3148   :  { %v1756_v36 = vadd.f32 %v3207_v60, %v1755_v34 }
0x314a   :  { %1758 = vrot.lane.b32.xlu0 %v1756_v36, %s2735_s14 }
0x314b   :  { %v1877_v50 = vpop.xlane.xlu0 %1876 }
0x314c   :  { %v1878_v45 = vadd.f32 %v3207_v60, %v1877_v50 }
0x314f   :  { %v1999_v37 = vpop.xlane.xlu0 %1998 }
0x3150   :  { %v2000_v46 = vadd.f32 %v3207_v60, %v1999_v37 }
0x3153   :  { %v2121_v39 = vpop.xlane.xlu0 %2120 }
0x3154   :  { %v2122_v40 = vadd.f32 %v3207_v60, %v2121_v39 }
0x3156   :  { %2124 = vrot.lane.b32.xlu0 %v2122_v40, %s2736_s15 }
0x316a   :  { %1632 = vadd.xlane.f32.xlu1 %v1631_v41 }
0x31b8   :  { %v1515_v43 = vpop.permute.xlu1 %1514 }
0x31b9   :  { %1518 = vst.msk [vmem:[#allocation8] sm:$0x3] %vm1517_vm1, %v1515_v43 }
0x31bc   :  { %v1759_v17 = vpop.permute.xlu0 %1758 }
0x31c8   :  { %v2125_v53 = vpop.permute.xlu0 %2124 }
0x31f3   :  { %v1633_v44 = vpop.xlane.xlu1 %1632 }
0x31f4   :  { %v1634_v3 = vadd.f32 %v3207_v60, %v1633_v44 }
0x31f6   :  { %1636 = vrot.lane.b32.xlu1 %v1634_v3, %s2737_s16 }
0x31fa   :  { %1880 = vrot.lane.b32.xlu1 %v1878_v45, %s2738_s17 }
0x31fe   :  { %2002 = vrot.lane.b32.xlu1 %v2000_v46, %s2739_s1 }
0x3268   :  { %v1637_v47 = vpop.permute.xlu1 %1636 }
0x3269   :  { %1640 = vst.msk [vmem:[#allocation8] sm:$0x3] %vm1639_vm2, %v1637_v47 }
0x326a   :  { %1762 = vst.msk [vmem:[#allocation8] sm:$0x3] %vm1761_vm3, %v1759_v17 }
0x326c   :  { %v1881_v49 = vpop.permute.xlu1 %1880 }
0x326d   :  { %1884 = vst.msk [vmem:[#allocation8] sm:$0x3] %vm1883_vm4, %v1881_v49 }
0x3270   :  { %v2003_v52 = vpop.permute.xlu1 %2002 }
0x3271   :  { %2006 = vst.msk [vmem:[#allocation8] sm:$0x3] %vm2005_vm5, %v2003_v52 }
0x3272   :  { %2128 = vst.msk [vmem:[#allocation8] sm:$0x3] %vm2127_vm6, %v2125_v53 }
0x3273   :  { %2686 = shalt.err (!%p2683_p0)
}
0x3274   :  { %2138 = dma.vmem_to_hbm [thread:$0]  %s2136_s0, 32, %s3303_s8, [#allocation5]  }
0x3275   :  { %2699 = dma.done.wait [#allocation5], 32  }
0x3276   :  { %2700 = vsyncadd [#allocation5], 4294967264 }
0x3277   :  { %2142 = vsyncpa [#allocation4], 1 }
0x3278   :  { %2143 = vsyncpa [#allocation7], 1 }
0x3279   :  { %2144 = vsyncpa [#allocation5], 1 }

</bundles_post_ra>
